<compile_context>
chip_gen: v7x
topology: tpu7x:2x2x1
jax: 0.10.0
libtpu: 0.0.40
codegen_flags: <defaults>
</compile_context>

<pallas_src>
import functools

import jax
import jax.numpy as jnp
from jax import lax
from jax.experimental import pallas as pl
from jax.experimental.pallas import tpu as pltpu

LEAKY_SLOPE = 0.01                       # torch.nn.LeakyReLU default
VMEM_LIMIT_BYTES = 40 * 1024 * 1024      # headroom for v7x (64 MiB/TC); fine on v5e/v6e


# ---------------------------------------------------------------------------
# Kernel 1: ScalarMix + fused src|tgt projection + LeakyReLU + (h1 @ Wb) fold
# ---------------------------------------------------------------------------
def _mix_proj_kernel(*refs, num_layers):
    # refs = (mix_ref, dec_0..dec_{L-1}, w_ref, b_ref, wb_ref, out_ref)
    # mix_ref : SMEM (L,)      f32   gamma * softmax(scalar_mix w)  [scalar prefetch]
    # dec_l   : VMEM (Tt, D)   bf16  row-tile of decoder hidden state, layer l
    # w_ref   : VMEM (D, 2H)   bf16  [src_w | tgt_w]
    # b_ref   : VMEM (1, 2H)   f32   [src_b | tgt_b]
    # wb_ref  : VMEM (H, H)    bf16  bilinear weight
    # out_ref : VMEM (Tt, 2H)  bf16  packed [m | h2], m = LeakyReLU(x@src_w+b)@Wb
    mix_ref = refs[0]
    dec_refs = refs[1:1 + num_layers]
    w_ref, b_ref, wb_ref, out_ref = refs[1 + num_layers:]

    # Per-layer scalar*tile accumulation in f32 (never materializes (L,Tt,D)).
    x = mix_ref[0] * dec_refs[0][...].astype(jnp.float32)
    for l in range(1, num_layers):
        x = x + mix_ref[l] * dec_refs[l][...].astype(jnp.float32)

    # Single fused (Tt, D) @ (D, 2H) MXU gemm; bf16 operands, f32 accumulation.
    h = jnp.dot(x.astype(jnp.bfloat16), w_ref[...],
                preferred_element_type=jnp.float32) + b_ref[...]
    h = jnp.where(h > 0, h, LEAKY_SLOPE * h)             # LeakyReLU (f32, VPU)

    hsz = wb_ref.shape[0]
    # Fold the bilinear weight in here (once per row) so the bilinear kernels
    # below are a single NT gemm per tile.
    m = jnp.dot(h[:, :hsz].astype(jnp.bfloat16), wb_ref[...],
                preferred_element_type=jnp.float32)
    out_ref[...] = jnp.concatenate(
        [m.astype(out_ref.dtype), h[:, hsz:].astype(out_ref.dtype)], axis=-1)


# ---------------------------------------------------------------------------
# Kernel 2: materialized bilinear form + lower-triangular mask
# ---------------------------------------------------------------------------
def _bilinear_mask_kernel(m_ref, h2_ref, out_ref, *, offset):
    # m_ref  : (Ta, H) bf16   (LeakyReLU(x@src_w+b) @ Wb) rows, a-tile
    # h2_ref : (Tb, H) bf16   tgt-projected rows, b-tile
    # out_ref: (Tb, Ta) f32   aligned[b, a]
    tb, ta = out_ref.shape
    i = pl.program_id(1)
    j = pl.program_id(2)
    # Square tiles + offset <= 0  =>  every tile with j > i is fully masked.
    fully_masked = j > i

    @pl.when(fully_masked)
    def _():
        out_ref[...] = jnp.full(out_ref.shape, -jnp.inf, dtype=out_ref.dtype)

    @pl.when(jnp.logical_not(fully_masked))
    def _():
        # aligned[b, a] = sum_y h2[b, y] * m[a, y]   (NT gemm, no transpose)
        aligned = lax.dot_general(h2_ref[...], m_ref[...],
                                  (((1,), (1,)), ((), ())),
                                  preferred_element_type=jnp.float32)
        row = lax.broadcasted_iota(jnp.int32, (tb, ta), 0) + i * tb
        col = lax.broadcasted_iota(jnp.int32, (tb, ta), 1) + j * ta
        keep = col <= row + offset
        # NOTE: -inf matches the torch module; with offset=-1 the first row is
        # fully masked and a downstream softmax/CE over it would produce NaN.
        out_ref[...] = jnp.where(keep, aligned, -jnp.inf).astype(out_ref.dtype)


# ---------------------------------------------------------------------------
# Kernel 3: fused pointer CrossEntropy (online softmax; logits never hit HBM)
# ---------------------------------------------------------------------------
def _pointer_ce_kernel(m_ref, h2_ref, tgt_ref, nll_ref, mx_sc, lse_sc, tl_sc,
                       *, offset):
    # m_ref  : (Ta, H) bf16, h2_ref: (Tb, H) bf16, tgt_ref: (Tb, 1) int32
    # nll_ref: (Tb, 1) f32   per-row -log softmax_a(aligned[b,:])[target[b]]
    # scratch: running max / sum-exp / target-logit, each (Tb, 1) f32
    tb = h2_ref.shape[0]
    ta = m_ref.shape[0]
    i = pl.program_id(1)
    j = pl.program_id(2)

    @pl.when(j == 0)
    def _():
        mx_sc[...] = jnp.full(mx_sc.shape, -jnp.inf, dtype=mx_sc.dtype)
        lse_sc[...] = jnp.zeros(lse_sc.shape, dtype=lse_sc.dtype)
        tl_sc[...] = jnp.zeros(tl_sc.shape, dtype=tl_sc.dtype)

    @pl.when(j <= i)        # tiles fully above the diagonal contribute nothing
    def _():
        s = lax.dot_general(h2_ref[...], m_ref[...],
                            (((1,), (1,)), ((), ())),
                            preferred_element_type=jnp.float32)
        row = lax.broadcasted_iota(jnp.int32, (tb, ta), 0) + i * tb
        col = lax.broadcasted_iota(jnp.int32, (tb, ta), 1) + j * ta
        keep = col <= row + offset
        s = jnp.where(keep, s, -jnp.inf)

        m_new = jnp.maximum(mx_sc[...], jnp.max(s, axis=-1, keepdims=True))
        alpha = jnp.exp(mx_sc[...] - m_new)
        p = jnp.exp(s - m_new)                         # masked -> exp(-inf) = 0
        lse_sc[...] = alpha * lse_sc[...] + jnp.sum(p, axis=-1, keepdims=True)
        mx_sc[...] = m_new

        hit = jnp.logical_and(keep, col == tgt_ref[...])
        tl_sc[...] += jnp.sum(jnp.where(hit, s, 0.0), axis=-1, keepdims=True)

    @pl.when(j == pl.num_programs(2) - 1)
    def _():
        nll_ref[...] = (mx_sc[...] + jnp.log(lse_sc[...]) - tl_sc[...]
                        ).astype(nll_ref.dtype)


# ---------------------------------------------------------------------------
# Wrappers
# ---------------------------------------------------------------------------
def prepare_aligner_params(params):
    """Hoisted once-per-model param prep (concat / cast / scalar-mix softmax)."""
    mixw = (params["scalar_mix_gamma"] *
            jax.nn.softmax(params["scalar_mix_w"])).astype(jnp.float32)
    w_st = jnp.concatenate([params["src_w"], params["tgt_w"]],
                           axis=1).astype(jnp.bfloat16)            # (D, 2H)
    b_st = jnp.concatenate([params["src_b"], params["tgt_b"]],
                           axis=1).astype(jnp.float32)             # (1, 2H)
    wb = params["bilinear_weight"].astype(jnp.bfloat16)            # (H, H)
    return {"mixw": mixw, "w_st": w_st, "b_st": b_st, "wb": wb}


def mix_project(dec_layers, prep, *, row_tile=256):
    """ScalarMix + projections + Wb fold.

    dec_layers: list of L arrays (B, T, D) (any float dtype; cast to bf16).
    Returns packed (B, T, 2H) bf16 = [m | h2].
    NOTE(v7x): with large L*D, cap row_tile so 2*L*row_tile*D*2B fits the
    64 MiB/TC VMEM; 256 is safe for BART-large-sized configs.
    """
    num_layers = len(dec_layers)
    B, T, D = dec_layers[0].shape
    H = prep["wb"].shape[0]
    row_tile = min(row_tile, T)
    assert T % row_tile == 0, "pad T to a multiple of row_tile"
    assert H % 128 == 0 and D % 128 == 0, "D, H must be multiples of 128"
    n_rows = T // row_tile
    dec_layers = [d.astype(jnp.bfloat16) for d in dec_layers]

    dec_specs = [pl.BlockSpec((None, row_tile, D), lambda b, i, mix: (b, i, 0))
                 for _ in range(num_layers)]
    return pl.pallas_call(
        functools.partial(_mix_proj_kernel, num_layers=num_layers),
        out_shape=jax.ShapeDtypeStruct((B, T, 2 * H), jnp.bfloat16),
        grid_spec=pltpu.PrefetchScalarGridSpec(
            num_scalar_prefetch=1,                  # mixw -> SMEM
            grid=(B, n_rows),
            in_specs=dec_specs + [
                pl.BlockSpec((D, 2 * H), lambda b, i, mix: (0, 0)),
                pl.BlockSpec((1, 2 * H), lambda b, i, mix: (0, 0)),
                pl.BlockSpec((H, H), lambda b, i, mix: (0, 0)),
            ],
            out_specs=pl.BlockSpec((None, row_tile, 2 * H),
                                   lambda b, i, mix: (b, i, 0)),
        ),
        compiler_params=pltpu.CompilerParams(
            dimension_semantics=("parallel", "parallel"),
            vmem_limit_bytes=VMEM_LIMIT_BYTES),
        cost_estimate=pl.CostEstimate(
            flops=(2 * B * T * D * 2 * H + 2 * B * T * H * H
                   + 2 * B * num_layers * T * D),
            transcendentals=0,
            bytes_accessed=(B * num_layers * T * D * 2 + D * 2 * H * 2
                            + 2 * H * 4 + H * H * 2 + B * T * 2 * H * 2)),
    )(prep["mixw"], *dec_layers, prep["w_st"], prep["b_st"], prep["wb"])


def bilinear_aligned_from_proj(proj, *, offset, tile=256, out_dtype=jnp.float32):
    """Materialized aligned (B, T_b, T_a) -- BilinearAligner.forward output."""
    B, T, H2 = proj.shape
    H = H2 // 2
    tile = min(tile, T)
    assert T % tile == 0 and tile % 128 == 0
    assert offset <= 0
    n = T // tile
    return pl.pallas_call(
        functools.partial(_bilinear_mask_kernel, offset=offset),
        out_shape=jax.ShapeDtypeStruct((B, T, T), out_dtype),
        grid_spec=pltpu.PrefetchScalarGridSpec(
            num_scalar_prefetch=0,
            grid=(B, n, n),
            in_specs=[
                # m half (block 0 along packed 2H axis); clamp to min(j, i) so
                # fully-masked tiles (j > i) reuse the previous block (no DMA).
                pl.BlockSpec((None, tile, H),
                             lambda b, i, j: (b, jnp.minimum(j, i), 0)),
                # h2 half (block 1 along packed 2H axis), constant across j.
                pl.BlockSpec((None, tile, H), lambda b, i, j: (b, i, 1)),
            ],
            out_specs=pl.BlockSpec((None, tile, tile),
                                   lambda b, i, j: (b, i, j)),
        ),
        compiler_params=pltpu.CompilerParams(
            dimension_semantics=("parallel", "parallel", "parallel"),
            vmem_limit_bytes=VMEM_LIMIT_BYTES),
        cost_estimate=pl.CostEstimate(
            flops=B * T * T * H,        # ~half the tiles run the gemm
            transcendentals=0,
            bytes_accessed=(B * n * T * H * 2 + B * T * H * 2
                            + B * T * T * jnp.dtype(out_dtype).itemsize)),
    )(proj, proj)


def pointer_loss_from_proj(proj, targets, *, offset, tile=256):
    """Fused pointer CE: nn.CrossEntropyLoss()(aligned.transpose(1,2), targets)
    computed with an online softmax over the a-axis; the (B,T,T) logits are
    never materialized in HBM.  Only valid for offset=0 (offset=-1 makes row 0
    fully masked -> NaN, matching the torch module)."""
    B, T, H2 = proj.shape
    H = H2 // 2
    tile = min(tile, T)
    assert T % tile == 0 and tile % 128 == 0
    assert offset <= 0
    n = T // tile
    tgt3 = targets.astype(jnp.int32)[..., None]          # (B, T, 1)
    nll = pl.pallas_call(
        functools.partial(_pointer_ce_kernel, offset=offset),
        out_shape=jax.ShapeDtypeStruct((B, T, 1), jnp.float32),
        grid_spec=pltpu.PrefetchScalarGridSpec(
            num_scalar_prefetch=0,
            grid=(B, n, n),
            in_specs=[
                pl.BlockSpec((None, tile, H),
                             lambda b, i, j: (b, jnp.minimum(j, i), 0)),
                pl.BlockSpec((None, tile, H), lambda b, i, j: (b, i, 1)),
                pl.BlockSpec((None, tile, 1), lambda b, i, j: (b, i, 0)),
            ],
            out_specs=pl.BlockSpec((None, tile, 1), lambda b, i, j: (b, i, 0)),
            scratch_shapes=[pltpu.VMEM((tile, 1), jnp.float32)] * 3,
        ),
        compiler_params=pltpu.CompilerParams(
            dimension_semantics=("parallel", "parallel", "arbitrary"),
            vmem_limit_bytes=VMEM_LIMIT_BYTES),
        cost_estimate=pl.CostEstimate(
            flops=B * T * T * H,
            transcendentals=B * T * T // 2,
            bytes_accessed=(B * n * T * H * 2 + B * T * H * 2
                            + B * T * 4 + B * T * 4)),
    )(proj, proj, tgt3)
    return jnp.mean(nll[..., 0])


# ---------------------------------------------------------------------------
# Demo / verification
# ---------------------------------------------------------------------------
if __name__ == "__main__":
    L = 3        # bart_layers
    B = 2        # batch
    T = 512      # decoder (target) length -> 2x2 tiles of 256 per batch
    D = 128      # d_model (input_size)
    H = 128      # aligner hidden_size
    OFFSET = 0   # var_format == 'target-side-pointer2'

    key = jax.random.PRNGKey(0)
    keys = jax.random.split(key, 8)

    # decoder_hidden_states[-L:] : list of (B, T, D), consumed in bf16.
    dec_f32 = jax.random.normal(keys[0], (L, B, T, D), jnp.float32)
    dec_layers = [dec_f32[l].astype(jnp.bfloat16) for l in range(L)]

    # Deterministic synthetic parameters (nn.Linear weights stored as (in, out)).
    params = {
        "scalar_mix_w": jax.random.normal(keys[1], (L,), jnp.float32) * 0.1,
        "scalar_mix_gamma": jnp.float32(1.0),
        "src_w": jax.random.normal(keys[2], (D, H), jnp.float32) * 0.1,
        "src_b": jax.random.normal(keys[3], (1, H), jnp.float32) * 0.1,
        "tgt_w": jax.random.normal(keys[4], (D, H), jnp.float32) * 0.1,
        "tgt_b": jax.random.normal(keys[5], (1, H), jnp.float32) * 0.1,
        # torch init is zeros; random small values make the test non-trivial
        "bilinear_weight": jax.random.normal(keys[6], (H, H), jnp.float32) * 0.1,
    }
    loss_strength = jnp.float32(1.0)

    # tgt_pt_pointer targets, guaranteed inside the unmasked (tril) region.
    raw = jax.random.randint(keys[7], (B, T), 0, T)
    targets = raw % (jnp.arange(T)[None, :] + 1)

    prep = prepare_aligner_params(params)                # hoisted param prep

    # Kernel 1 (shared by both consumers).
    proj = mix_project(dec_layers, prep, row_tile=256)

    # Materialized aligned (BilinearAligner.forward return value).
    aligned = jax.block_until_ready(
        bilinear_aligned_from_proj(proj, offset=OFFSET, tile=256))

    # Fused pointer loss (Text2GraphPoint2Tgt.forward's pointer_loss).
    pointer_loss = jax.block_until_ready(
        pointer_loss_from_proj(proj, targets, offset=OFFSET, tile=256))

    # ---- pure-JAX f32 reference of the same math -------------------------
    dec_hi = [d.astype(jnp.float32) for d in dec_layers]
    mixw = params["scalar_mix_gamma"] * jax.nn.softmax(params["scalar_mix_w"])
    x = sum(mixw[l] * dec_hi[l] for l in range(L))
    h1 = x @ params["src_w"] + params["src_b"]
    h1 = jnp.where(h1 > 0, h1, LEAKY_SLOPE * h1)
    h2 = x @ params["tgt_w"] + params["tgt_b"]
    h2 = jnp.where(h2 > 0, h2, LEAKY_SLOPE * h2)
    aligned_ref = jnp.einsum("qax,xy,qby->qba", h1, params["bilinear_weight"], h2)
    keep = jnp.arange(T)[None, :] <= jnp.arange(T)[:, None] + OFFSET
    aligned_ref = jnp.where(keep[None], aligned_ref, -jnp.inf)

    finite = jnp.isfinite(aligned_ref)
    # Mask pattern must match exactly.
    assert bool(jnp.all(jnp.isfinite(aligned) == finite))
    # Values: bf16 MXU operands (f32 accumulation) -> bf16-sized tolerance.
    assert bool(jnp.allclose(jnp.where(finite, aligned, 0.0),
                             jnp.where(finite, aligned_ref, 0.0),
                             atol=0.3, rtol=3e-2))

    # Fused CE vs CE computed from the kernel's own logits (same rounding path).
    logp = jax.nn.log_softmax(aligned, axis=-1)
    nll_chk = -jnp.take_along_axis(logp, targets[..., None], axis=-1)[..., 0]
    assert bool(jnp.isfinite(pointer_loss))
    assert bool(jnp.allclose(pointer_loss, jnp.mean(nll_chk), atol=1e-2, rtol=1e-3))

    # TODO(synk): ml_loss from the pretrained BART forward is not reproducible
    # here; only the pointer-loss contribution of the total loss is computed.
    total_loss = jax.block_until_ready(pointer_loss * loss_strength)
    assert bool(jnp.isfinite(total_loss))

    print("KERNEL_OK")
</pallas_src>

<mosaic_0001>
module attributes {stable_mosaic.version = 11 : i64} {
  func.func @_mix_proj_kernel(%arg0: i32, %arg1: i32, %arg2: memref<3xf32, #tpu.memory_space<smem>>, %arg3: memref<1x256x128xbf16, #tpu.memory_space<vmem>>, %arg4: memref<1x256x128xbf16, #tpu.memory_space<vmem>>, %arg5: memref<1x256x128xbf16, #tpu.memory_space<vmem>>, %arg6: memref<128x256xbf16, #tpu.memory_space<vmem>>, %arg7: memref<1x256xf32, #tpu.memory_space<vmem>>, %arg8: memref<128x128xbf16, #tpu.memory_space<vmem>>, %arg9: memref<1x256x256xbf16, #tpu.memory_space<vmem>>) attributes {dimension_semantics = [#tpu.dimension_semantics<parallel>, #tpu.dimension_semantics<parallel>], iteration_bounds = array<i64: 2, 2>, scalar_prefetch = 1 : i64, scratch_operands = 0 : i64, tpu.core_type = #tpu.core_type<tc>, window_params = [{transform_indices = @transform_0, window_bounds = array<i64: 1, 256, 128>}, {transform_indices = @transform_1, window_bounds = array<i64: 1, 256, 128>}, {transform_indices = @transform_2, window_bounds = array<i64: 1, 256, 128>}, {pipeline_mode = #tpu.pipeline_mode<synchronous>, transform_indices = @transform_3, window_bounds = array<i64: 128, 256>}, {pipeline_mode = #tpu.pipeline_mode<synchronous>, transform_indices = @transform_4, window_bounds = array<i64: 1, 256>}, {pipeline_mode = #tpu.pipeline_mode<synchronous>, transform_indices = @transform_5, window_bounds = array<i64: 128, 128>}, {transform_indices = @transform_6, window_bounds = array<i64: 1, 256, 256>}]} {
    %c0 = arith.constant 0 : index
    %0 = memref.load %arg2[%c0] : memref<3xf32, #tpu.memory_space<smem>>
    %c0_0 = arith.constant 0 : index
    %c0_1 = arith.constant 0 : index
    %c0_2 = arith.constant 0 : index
    %1 = vector.load %arg3[%c0_0, %c0_1, %c0_2] : memref<1x256x128xbf16, #tpu.memory_space<vmem>>, vector<1x256x128xbf16>
    %2 = vector.shape_cast %1 : vector<1x256x128xbf16> to vector<256x128xbf16>
    %3 = arith.extf %2 : vector<256x128xbf16> to vector<256x128xf32>
    %4 = vector.broadcast %0 : f32 to vector<256x128xf32>
    %5 = arith.mulf %4, %3 : vector<256x128xf32>
    %c1 = arith.constant 1 : index
    %6 = memref.load %arg2[%c1] : memref<3xf32, #tpu.memory_space<smem>>
    %c0_3 = arith.constant 0 : index
    %c0_4 = arith.constant 0 : index
    %c0_5 = arith.constant 0 : index
    %7 = vector.load %arg4[%c0_3, %c0_4, %c0_5] : memref<1x256x128xbf16, #tpu.memory_space<vmem>>, vector<1x256x128xbf16>
    %8 = vector.shape_cast %7 : vector<1x256x128xbf16> to vector<256x128xbf16>
    %9 = arith.extf %8 : vector<256x128xbf16> to vector<256x128xf32>
    %10 = vector.broadcast %6 : f32 to vector<256x128xf32>
    %11 = arith.mulf %10, %9 : vector<256x128xf32>
    %12 = arith.addf %5, %11 : vector<256x128xf32>
    %c2 = arith.constant 2 : index
    %13 = memref.load %arg2[%c2] : memref<3xf32, #tpu.memory_space<smem>>
    %c0_6 = arith.constant 0 : index
    %c0_7 = arith.constant 0 : index
    %c0_8 = arith.constant 0 : index
    %14 = vector.load %arg5[%c0_6, %c0_7, %c0_8] : memref<1x256x128xbf16, #tpu.memory_space<vmem>>, vector<1x256x128xbf16>
    %15 = vector.shape_cast %14 : vector<1x256x128xbf16> to vector<256x128xbf16>
    %16 = arith.extf %15 : vector<256x128xbf16> to vector<256x128xf32>
    %17 = vector.broadcast %13 : f32 to vector<256x128xf32>
    %18 = arith.mulf %17, %16 : vector<256x128xf32>
    %19 = arith.addf %12, %18 : vector<256x128xf32>
    %20 = arith.truncf %19 : vector<256x128xf32> to vector<256x128xbf16>
    %c0_9 = arith.constant 0 : index
    %c0_10 = arith.constant 0 : index
    %21 = vector.load %arg6[%c0_9, %c0_10] : memref<128x256xbf16, #tpu.memory_space<vmem>>, vector<128x256xbf16>
    %cst = arith.constant dense<0.000000e+00> : vector<256x256xf32>
    %22 = tpu.matmul %20, %21, %cst {dimension_numbers = #tpu.dot_dimension_numbers<[1], [0], [0], [1], [0, 0, 1, 1], [], []>} : vector<256x128xbf16>, vector<128x256xbf16>, vector<256x256xf32> -> vector<256x256xf32>
    %c0_11 = arith.constant 0 : index
    %c0_12 = arith.constant 0 : index
    %23 = vector.load %arg7[%c0_11, %c0_12] : memref<1x256xf32, #tpu.memory_space<vmem>>, vector<1x256xf32>
    %24 = vector.broadcast %23 : vector<1x256xf32> to vector<256x256xf32>
    %25 = arith.addf %22, %24 : vector<256x256xf32>
    %cst_13 = arith.constant 0.000000e+00 : f32
    %26 = vector.broadcast %cst_13 : f32 to vector<256x256xf32>
    %27 = arith.cmpf ogt, %25, %26 : vector<256x256xf32>
    %cst_14 = arith.constant 0.00999999977 : f32
    %28 = vector.broadcast %cst_14 : f32 to vector<256x256xf32>
    %29 = arith.mulf %28, %25 : vector<256x256xf32>
    %30 = arith.select %27, %25, %29 : vector<256x256xi1>, vector<256x256xf32>
    %31 = vector.extract_strided_slice %30 {offsets = [0, 0], sizes = [256, 128], strides = [1, 1]} : vector<256x256xf32> to vector<256x128xf32>
    %32 = arith.truncf %31 : vector<256x128xf32> to vector<256x128xbf16>
    %c0_15 = arith.constant 0 : index
    %c0_16 = arith.constant 0 : index
    %33 = vector.load %arg8[%c0_15, %c0_16] : memref<128x128xbf16, #tpu.memory_space<vmem>>, vector<128x128xbf16>
    %cst_17 = arith.constant dense<0.000000e+00> : vector<256x128xf32>
    %34 = tpu.matmul %32, %33, %cst_17 {dimension_numbers = #tpu.dot_dimension_numbers<[1], [0], [0], [1], [0, 0, 1, 1], [], []>} : vector<256x128xbf16>, vector<128x128xbf16>, vector<256x128xf32> -> vector<256x128xf32>
    %35 = arith.truncf %34 : vector<256x128xf32> to vector<256x128xbf16>
    %36 = vector.extract_strided_slice %30 {offsets = [0, 128], sizes = [256, 128], strides = [1, 1]} : vector<256x256xf32> to vector<256x128xf32>
    %37 = arith.truncf %36 : vector<256x128xf32> to vector<256x128xbf16>
    %38 = tpu.concatenate %35, %37 in 1 : vector<256x128xbf16>, vector<256x128xbf16> -> vector<256x256xbf16>
    %c0_18 = arith.constant 0 : index
    %c0_19 = arith.constant 0 : index
    %c0_20 = arith.constant 0 : index
    %39 = vector.load %arg9[%c0_18, %c0_19, %c0_20] : memref<1x256x256xbf16, #tpu.memory_space<vmem>>, vector<1x256x256xbf16>
    %40 = vector.shape_cast %39 : vector<1x256x256xbf16> to vector<256x256xbf16>
    %41 = vector.shape_cast %38 : vector<256x256xbf16> to vector<1x256x256xbf16>
    tpu.vector_store %arg9[%c0_18, %c0_19, %c0_20], %41 {strides = array<i32>} : memref<1x256x256xbf16, #tpu.memory_space<vmem>>, vector<1x256x256xbf16>,
    return
  }
  func.func @transform_0(%arg0: i32, %arg1: i32, %arg2: memref<3xf32, #tpu.memory_space<smem>>) -> (i32, i32, i32) {
    %c0_i32 = arith.constant 0 : i32
    %c0_i32_0 = arith.constant 0 : i32
    return %arg0, %arg1, %c0_i32 : i32, i32, i32
  }
  func.func @transform_1(%arg0: i32, %arg1: i32, %arg2: memref<3xf32, #tpu.memory_space<smem>>) -> (i32, i32, i32) {
    %c0_i32 = arith.constant 0 : i32
    %c0_i32_0 = arith.constant 0 : i32
    return %arg0, %arg1, %c0_i32 : i32, i32, i32
  }
  func.func @transform_2(%arg0: i32, %arg1: i32, %arg2: memref<3xf32, #tpu.memory_space<smem>>) -> (i32, i32, i32) {
    %c0_i32 = arith.constant 0 : i32
    %c0_i32_0 = arith.constant 0 : i32
    return %arg0, %arg1, %c0_i32 : i32, i32, i32
  }
  func.func @transform_3(%arg0: i32, %arg1: i32, %arg2: memref<3xf32, #tpu.memory_space<smem>>) -> (i32, i32) {
    %c0_i32 = arith.constant 0 : i32
    %c0_i32_0 = arith.constant 0 : i32
    %c0_i32_1 = arith.constant 0 : i32
    return %c0_i32, %c0_i32_0 : i32, i32
  }
  func.func @transform_4(%arg0: i32, %arg1: i32, %arg2: memref<3xf32, #tpu.memory_space<smem>>) -> (i32, i32) {
    %c0_i32 = arith.constant 0 : i32
    %c0_i32_0 = arith.constant 0 : i32
    %c0_i32_1 = arith.constant 0 : i32
    return %c0_i32, %c0_i32_0 : i32, i32
  }
  func.func @transform_5(%arg0: i32, %arg1: i32, %arg2: memref<3xf32, #tpu.memory_space<smem>>) -> (i32, i32) {
    %c0_i32 = arith.constant 0 : i32
    %c0_i32_0 = arith.constant 0 : i32
    %c0_i32_1 = arith.constant 0 : i32
    return %c0_i32, %c0_i32_0 : i32, i32
  }
  func.func @transform_6(%arg0: i32, %arg1: i32, %arg2: memref<3xf32, #tpu.memory_space<smem>>) -> (i32, i32, i32) {
    %c0_i32 = arith.constant 0 : i32
    %c0_i32_0 = arith.constant 0 : i32
    return %arg0, %arg1, %c0_i32 : i32, i32, i32
  }
}

</mosaic_0001>

<bundles_post_ra>
// kernel: tpu_custom_call.1
= control target key start
LH: loop header
LB: loop body
LE: loop exit
PB: predicated region body
PF: predicated region fallthrough
CT: control target
= control target key end

     0   :  { %s3724_s0 = inlined_call_operand.hbm [shape: f32[3], index: 0, kind: input, shape index: {}]   ;;  %s3725_s1 = inlined_call_operand.hbm [shape: bf16[2,512,128], index: 1, kind: input, shape index: {}]   ;;  %s3726_s2 = inlined_call_operand.hbm [shape: bf16[2,512,128], index: 2, kind: input, shape index: {}]   ;;  %s3727_s3 = inlined_call_operand.hbm [shape: bf16[2,512,128], index: 3, kind: input, shape index: {}]   ;;  %s3728_s4 = inlined_call_operand.hbm [shape: bf16[128,256], index: 4, kind: input, shape index: {}]   ;;  %s3729_s5 = inlined_call_operand.vmem [shape: f32[1,256], index: 5, kind: input, shape index: {}]   ;;  %s3730_s6 = inlined_call_operand.hbm [shape: bf16[128,128], index: 6, kind: input, shape index: {}]   ;;  %s3731_s7 = inlined_call_operand.hbm [shape: bf16[2,512,256], index: 7, kind: output, shape index: {}]  }
   0x1   :  { %3753 = sst [smem:[#allocation27_spill]] %s3726_s2  ;;  %s2516_s26 = scalar_lea.hbm %s3724_s0, 16 }
   0x2   :  { %3754 = sst [smem:[#allocation28_spill]] %s3728_s4  ;;  %p2517_p0 = scmp.ne.s32.totalorder %s3724_s0, %s2516_s26 }
   0x3   :  { %3755 = sst [smem:[#allocation29_spill]] %s3731_s7  ;;  %p2520_p1 = scmp.lt.u32.totalorder %s2516_s26, %s3724_s0 }
   0x5   :  { %p2522_p2 = pnand %p2520_p1, %p2517_p0 }
   0x7   :  { %2525 = shalt.err (!%p2522_p2)  }
   0x8   :  { %s2782_s8 = smov [#allocation3]  }
   0x9   :  { %13 = dma.hbm_to_smem %s3724_s0, 16, %s2782_s8, [#allocation2] }
   0xa   :  { %2732 = dma.done.wait [#allocation2], 16 }
   0xb   :  { %2733 = vsyncadd [#allocation2], 4294967280 }
   0xc   :  { %15 = sfence }
   0xd   :  { %16 = vsyncpa [#allocation5], 0 }
   0xe   :  { %18 = vsyncpa [#allocation5 + $0x1], 0 }
   0xf   :  { %19 = vsyncpa [#allocation8], 0 }
  0x10   :  { %21 = vsyncpa [#allocation8 + $0x1], 0 }
  0x11   :  { %22 = vsyncpa [#allocation11], 0 }
  0x12   :  { %23 = vsyncpa [#allocation6], 0 }
  0x13   :  { %25 = vsyncpa [#allocation6 + $0x1], 0  ;;  %s2848_s11 = smov 0   ;;  %s2850_s12 = smov 0  }
  0x14   :  { %s2852_s13 = smov 0   ;;  %s2854_s14 = smov 0  }
  0x15   :  { %s2856_s15 = smov 0   ;;  %s2858_s0 = smov 0  }
  0x16   :  { %s2860_s16 = smov 0   ;;  %s2862_s17 = smov 0  }
  0x17 LB: > { %3756 = sst [smem:[#allocation19_spill]] %s2752_s11  ;;  %s2889_s18 = sadd.s32 4294967295, %s2780_s17   ;;  %s2780_s17 = sphi %s2862_s17, %s31_s17   ;;  %s2776_s16 = sphi %s2860_s16, %s3796_s16   ;;  %s2772_s0 = sphi %s2858_s0, %s3795_s0   ;;  %s2768_s15 = sphi %s2856_s15, %s3794_s15   ;;  %s2764_s14 = sphi %s2854_s14, %s3793_s14   ;;  %s2760_s13 = sphi %s2852_s13, %s3799_s13   ;;  %s2756_s12 = sphi %s2850_s12, %s3798_s12   ;;  %s2752_s11 = sphi %s2848_s11, %s3797_s11  }
  0x18   : > { %3757 = sst [smem:[#allocation20_spill]] %s2772_s0  ;;  %s1920_s19 = sadd.s32 4294967294, %s2780_s17  }
  0x19   : > { %3758 = sst [smem:[#allocation21_spill]] %s2776_s16  ;;  %p59_p3 = scmp.ne.s32.totalorder %s2760_s13, %s2756_s12 }
  0x1a   : > { %p60_p4 = scmp.eq.s32.totalorder %s2780_s17, 0  ;;  %p65_p5 = scmp.ne.s32.totalorder %s2756_s12, %s2752_s11 }
  0x1b   : > { %p3734_p6 = scmp.eq.s32.totalorder %s2889_s18, 0  ;;  %p210_p7 = scmp.eq.s32.totalorder %s2889_s18, 3 }
  0x1c   : > { %p2900_p8 = por %p60_p4, %p59_p3  ;;  %p216_p9 = scmp.eq.s32.totalorder %s1920_s19, 3 }
  0x1d   : > { %p2906_p10 = por %p3734_p6, %p65_p5  ;;  %p2910_p11 = por %p210_p7, %p59_p3 }
  0x1e   : > { %s3759_s21 = scalar_select %p2900_p8, 1, 0 }
  0x1f   : > { %s3760_s22 = scalar_select %p2906_p10, 1, 0 }
  0x20   : > { %s3761_s23 = scalar_select %p2910_p11, 1, 0 }
  0x21   : > { %p2914_p12 = por %p216_p9, %p65_p5  ;;  %p1921_p13 = scmp.ge.s32.totalorder %s2780_s17, 1 }
  0x22   : > { %3762 = sst [smem:[#allocation22_spill]] %s3761_s23  ;;  %p223_p0 = scmp.lt.s32.totalorder %s2780_s17, 5 }
  0x23   : > { %s3763_s24 = scalar_select %p2914_p12, 1, 0 }
  0x24   : > { %p2920_p1 = pnand %p1921_p13, %p223_p0  ;;  %s2783_s26 = smov [#allocation10]  }
  0x25   : > { %3764 = sst [smem:[#allocation23_spill]] %s3763_s24  ;;  %s235_s27 = sshll.u32 %s2783_s26, 4  ;;  %s236_s27 = int_to_ptr.vmem [resolvable:$true] %s235_s27 }
  0x26   : > { %s3765_s25 = scalar_select %p2920_p1, 1, 0 }
  0x27   : > { %p2383_p2 = pneg %p2920_p1  ;;  %s43_s29 = sadd.s32 1, %s2776_s16 }
  0x28   : > { %s40_s30 = sadd.s32 1, %s2772_s0  ;;  %s3767_s4 = sld [smem:[#allocation28_spill]] }
  0x29   : > { %p2928_p3 = pnand %p2383_p2, %p3734_p6 }
  0x2b   : > { %s3766_s28 = scalar_select %p2928_p3, 1, 0 }
  0x2c   : > { %p3744_p5 = pneg %p2928_p3 }
  0x2e   : > { %s2526_s10 = scalar_lea.hbm %s3767_s4, 2048 }
  0x2f   : > { %p2527_p4 = scmp.ne.s32.totalorder %s3767_s4, %s2526_s10  ;;  %p2533_p13 = scmp.lt.u32.totalorder %s2526_s10, %s3767_s4 }
  0x31   : > { %p2529_p7 = pnand %p3744_p5, %p2527_p4 }
  0x33   : > { %p2530_p9 = pneg %p2529_p7 }
  0x35   : > { %p2535_p0 = pnand %p2533_p13, %p2530_p9 }
  0x37   : > { %2538 = shalt.err (!%p2535_p0)
}
  0x38   : > { %s2539_s11 = scalar_lea.vmem %s236_s27, 2048  ;;  %p2547_p11 = scmp.lt.s32.totalorder %s236_s27, %s236_s27 }
  0x39   : > { %p2540_p2 = scmp.ne.s32.totalorder %s236_s27, %s2539_s11  ;;  %p2548_p10 = scmp.lt.s32.totalorder %s2539_s11, %s2539_s11 }
  0x3b   : > { %p2542_p6 = pnand %p2540_p2, %p3744_p5  ;;  %p2549_p1 = por %p2548_p10, %p2547_p11 }
  0x3d   : > { %p2543_p12 = pneg %p2542_p6 }
  0x3f   : > { %p2550_p8 = pnand %p2549_p1, %p2543_p12 }
  0x41   : > { %2553 = shalt.err (!%p2550_p8)
}
  0x42   : > { %s2784_s20 = smov 128   ;;  %s2785_s24 = smov 8  }
  0x43   : > { %2386 = dma.hbm_to_vmem [thread:$0]  (!%p2928_p3), %s3767_s4, 2048, %s236_s27, [#allocation11], %s2784_s20, %s2784_s20, %s2785_s24  }
  0x44   : > { %p41_p6 = scmp.ge.s32.totalorder %s40_s30, 2  ;;  %p2406_p10 = scmp.lt.s32.totalorder %s2780_s17, 4 }
  0x45   : > { %s3739_s10 = sand.u32 1, %s2760_s13   ;;  %s1926_s26 = sshll.u32 %s2772_s0, 5 }
  0x46   : > { %s3801_s30 = smov (%p41_p6, %s40_s30), 0  ;;  %s3803_s29 = smov (!%p41_p6, %s43_s29), %s2776_s16 }
  0x47   : > { %3768 = sst [smem:[#allocation24_spill]] %s3801_s30  ;;  %s48_s11 = ssub.s32 %s2772_s0, %s3801_s30 }
  0x48   : > { %p45_p8 = scmp.ge.s32.totalorder %s3803_s29, 2  ;;  %s2965_s19 = sshll.u32 %s3739_s10, 7 }
  0x49   : > { %s1927_s7 = sshll.u32 %s2776_s16, 6  ;;  %p3770_p11 = scmp.ne.s32.totalorder %s3759_s21, 0 }
  0x4a   : > { %s3805_s29 = smov (%p45_p8, %s3803_s29), 0  ;;  %s275_s27 = sadd.s32 %s1927_s7, %s1926_s26 }
  0x4b   : > { %3769 = sst [smem:[#allocation25_spill]] %s3805_s29  ;;  %p2973_p12 = pnand %p2406_p10, %p3770_p11 }
  0x4c   : > { %s47_s24 = ssub.s32 %s2776_s16, %s3805_s29  ;;  %s2979_s8 = sshll.u32 %s275_s27, 6 }
  0x4d   : > { %s3771_s20 = scalar_select %p2973_p12, 1, 0 }
  0x4e   : > { %s49_s9 = sor.u32 %s48_s11, %s47_s24  ;;  %s288_s10 = sand.u32 1, %s2780_s17  }
  0x4f   : > { %p50_p1 = scmp.eq.s32.totalorder %s49_s9, 0  ;;  %s3772_s4 = sadd.s32 1, %s2760_s13 }
  0x50   : > { %s3774_s2 = sld [smem:[#allocation27_spill]]  ;;  %s292_s21 = scalar_lea.vmem [#allocation7], %s2965_s19 }
  0x51   : > { %s2985_s30 = scalar_select %p50_p1, %s2760_s13, %s3772_s4  }
  0x52   : > { %s301_s26 = sshll.u32 %s292_s21, 4  ;;  %s2996_s27 = scalar_lea.sflag [#allocation8], %s288_s10  ;;  %s2994_s26 = int_to_ptr.vmem [resolvable:$true] %s301_s26 }
  0x53   : > { %3773 = sst [smem:[#allocation26_spill]] %s2985_s30  ;;  %p3002_p7 = pneg %p2973_p12 }
  0x55   : > { %s3775_s4 = scalar_select %p3002_p7, 1, 0 }
  0x56   : > { %s2991_s7 = scalar_lea.hbm %s3774_s2, %s2979_s8  ;;  %s2559_s24 = scalar_lea.hbm %s3774_s2, 8192 }
  0x57   : > { %s2554_s11 = scalar_lea.hbm %s2991_s7, 2048  ;;  %p2560_p0 = scmp.lt.u32.totalorder %s2991_s7, %s3774_s2 }
  0x58   : > { %p2555_p4 = scmp.ne.s32.totalorder %s2991_s7, %s2554_s11  ;;  %p2561_p2 = scmp.lt.u32.totalorder %s2559_s24, %s2554_s11 }
  0x59   : > { %p2563_p10 = scmp.lt.u32.totalorder %s2554_s11, %s2991_s7 }
  0x5a   : > { %p2557_p9 = pnand %p3002_p7, %p2555_p4  ;;  %p2562_p6 = por %p2561_p2, %p2560_p0 }
  0x5c   : > { %p2558_p13 = pneg %p2557_p9  ;;  %p2564_p8 = por %p2563_p10, %p2562_p6 }
  0x5e   : > { %p2565_p11 = pnand %p2564_p8, %p2558_p13 }
  0x60   : > { %2568 = shalt.err (!%p2565_p11)
}
  0x61   : > { %s2569_s10 = scalar_lea.vmem %s2994_s26, 2048  ;;  %s2786_s0 = smov [#allocation7]  }
  0x62   : > { %p2570_p1 = scmp.ne.s32.totalorder %s2994_s26, %s2569_s10  ;;  %s2574_s23 = sshll.u32 %s2786_s0, 4  ;;  %s2575_s23 = int_to_ptr.vmem [resolvable:$false] %s2574_s23 }
  0x63   : > { %s2576_s9 = scalar_lea.vmem %s2575_s23, 4096  ;;  %p2577_p5 = scmp.lt.s32.totalorder %s2994_s26, %s2575_s23 }
  0x64   : > { %p2572_p4 = pnand %p2570_p1, %p3002_p7  ;;  %p2578_p3 = scmp.lt.s32.totalorder %s2576_s9, %s2569_s10 }
  0x66   : > { %p2573_p9 = pneg %p2572_p4  ;;  %p2579_p0 = por %p2578_p3, %p2577_p5 }
  0x68   : > { %p2580_p2 = pnand %p2579_p0, %p2573_p9 }
  0x6a   : > { %2583 = shalt.err (!%p2580_p2)
}
  0x6b   : > { %s2787_s11 = smov 64   ;;  %s2788_s24 = smov 4  }
  0x6c   : > { %2396 = dma.hbm_to_vmem [thread:$0]  (!%p2973_p12), %s2991_s7, 2048, %s2994_s26, %s2996_s27, %s2787_s11, %s2787_s11, %s2788_s24  }
  0x6d   : > { %s2789_s21 = smov [#allocation12]   ;;  %s2584_s9 = scalar_lea.hbm %s3730_s6, 1024 }
  0x6e   : > { %s251_s0 = sshll.u32 %s2789_s21, 4  ;;  %p2585_p3 = scmp.ne.s32.totalorder %s3730_s6, %s2584_s9  ;;  %s252_s0 = int_to_ptr.vmem [resolvable:$true] %s251_s0 }
  0x6f   : > { %p3776_p5 = scmp.ne.s32.totalorder %s3766_s28, 0  ;;  %p2591_p8 = scmp.lt.u32.totalorder %s2584_s9, %s3730_s6 }
  0x71   : > { %p3777_p13 = pneg %p3776_p5 }
  0x73   : > { %p2587_p6 = pnand %p2585_p3, %p3777_p13 }
  0x75   : > { %p2588_p10 = pneg %p2587_p6 }
  0x77   : > { %p2593_p11 = pnand %p2591_p8, %p2588_p10 }
  0x79   : > { %2596 = shalt.err (!%p2593_p11)
}
  0x7a   : > { %s2597_s7 = scalar_lea.vmem %s252_s0, 1024  ;;  %p3778_p4 = pmov %p3777_p13 }
  0x7b   : > { %p2598_p1 = scmp.ne.s32.totalorder %s252_s0, %s2597_s7  ;;  %p2605_p2 = scmp.lt.s32.totalorder %s252_s0, %s252_s0 }
  0x7c   : > { %p2606_p12 = scmp.lt.s32.totalorder %s2597_s7, %s2597_s7 }
  0x7d   : > { %p2600_p9 = pnand %p2598_p1, %p3778_p4 }
  0x7e   : > { %p2607_p7 = por %p2606_p12, %p2605_p2 }
  0x7f   : > { %p2601_p0 = pneg %p2600_p9 }
  0x81   : > { %p2608_p3 = pnand %p2607_p7, %p2601_p0 }
  0x83   : > { %2611 = shalt.err (!%p2608_p3)
}
  0x84   : > { %2389 = dma.hbm_to_vmem [thread:$0]  (!%p3776_p5), %s3730_s6, 1024, %s252_s0, [#allocation11], %s2787_s11, %s2787_s11, %s2788_s24  }
  0x85   : > { %s3056_s26 = scalar_lea.hbm %s3725_s1, %s2979_s8  ;;  %s269_s28 = scalar_lea.vmem [#allocation4], %s2965_s19 }
  0x86   : > { %s278_s21 = sshll.u32 %s269_s28, 4  ;;  %s3779_s23 = sand.u32 1, %s2760_s13   ;;  %s3059_s21 = int_to_ptr.vmem [resolvable:$true] %s278_s21 }
  0x87   : > { %s3063_s10 = scalar_lea.sflag [#allocation5], %s3779_s23  ;;  %s2612_s9 = scalar_lea.hbm %s3056_s26, 2048 }
  0x88   : > { %p2613_p12 = scmp.ne.s32.totalorder %s3056_s26, %s2612_s9  ;;  %p3780_p7 = scmp.ne.s32.totalorder %s3775_s4, 0 }
  0x89   : > { %s2617_s2 = scalar_lea.hbm %s3725_s1, 8192  ;;  %p2618_p6 = scmp.lt.u32.totalorder %s3056_s26, %s3725_s1 }
  0x8a   : > { %p2615_p5 = pnand %p2613_p12, %p3780_p7  ;;  %p2619_p10 = scmp.lt.u32.totalorder %s2617_s2, %s2612_s9 }
  0x8b   : > { %p2621_p11 = scmp.lt.u32.totalorder %s2612_s9, %s3056_s26 }
  0x8c   : > { %p2616_p13 = pneg %p2615_p5  ;;  %p2620_p8 = por %p2619_p10, %p2618_p6 }
  0x8e   : > { %p2622_p1 = por %p2621_p11, %p2620_p8 }
  0x90   : > { %p2623_p4 = pnand %p2622_p1, %p2616_p13 }
  0x92   : > { %2626 = shalt.err (!%p2623_p4)
}
  0x93   : > { %s2627_s30 = scalar_lea.vmem %s3059_s21, 2048  ;;  %s2790_s28 = smov [#allocation4]  }
  0x94   : > { %p2628_p9 = scmp.ne.s32.totalorder %s3059_s21, %s2627_s30  ;;  %s2632_s23 = sshll.u32 %s2790_s28, 4  ;;  %s2633_s23 = int_to_ptr.vmem [resolvable:$false] %s2632_s23 }
  0x95   : > { %s2634_s0 = scalar_lea.vmem %s2633_s23, 4096  ;;  %p2635_p3 = scmp.lt.s32.totalorder %s3059_s21, %s2633_s23 }
  0x96   : > { %p2630_p0 = pnand %p2628_p9, %p3780_p7  ;;  %p2636_p12 = scmp.lt.s32.totalorder %s2634_s0, %s2627_s30 }
  0x98   : > { %p2631_p2 = pneg %p2630_p0  ;;  %p2637_p5 = por %p2636_p12, %p2635_p3 }
  0x9a   : > { %p2638_p6 = pnand %p2637_p5, %p2631_p2 }
  0x9c   : > { %2641 = shalt.err (!%p2638_p6)
}
  0x9d   : > { %p3781_p13 = scmp.ne.s32.totalorder %s3771_s20, 0  ;;  %s3094_s2 = scalar_lea.hbm %s3727_s3, %s2979_s8 }
  0x9e   : > { %s315_s16 = scalar_lea.vmem [#allocation9], %s2965_s19  ;;  %s2642_s30 = scalar_lea.hbm %s3094_s2, 2048 }
  0x9f   : > { %2393 = dma.hbm_to_vmem [thread:$0]  (!%p3781_p13), %s3056_s26, 2048, %s3059_s21, %s3063_s10, %s2787_s11, %s2787_s11, %s2788_s24  }
  0xa0   : > { %s324_s29 = sshll.u32 %s315_s16, 4  ;;  %p2643_p10 = scmp.ne.s32.totalorder %s3094_s2, %s2642_s30  ;;  %s3097_s29 = int_to_ptr.vmem [resolvable:$true] %s324_s29 }
  0xa1   : > { %s2647_s21 = scalar_lea.hbm %s3727_s3, 8192  ;;  %p2648_p1 = scmp.lt.u32.totalorder %s3094_s2, %s3727_s3 }
  0xa2   : > { %p2645_p8 = pnand %p2643_p10, %p3780_p7  ;;  %p2649_p4 = scmp.lt.u32.totalorder %s2647_s21, %s2642_s30 }
  0xa3   : > { %p2651_p0 = scmp.lt.u32.totalorder %s2642_s30, %s3094_s2 }
  0xa4   : > { %p2646_p11 = pneg %p2645_p8  ;;  %p2650_p9 = por %p2649_p4, %p2648_p1 }
  0xa6   : > { %p2652_p2 = por %p2651_p0, %p2650_p9 }
  0xa8   : > { %p2653_p3 = pnand %p2652_p2, %p2646_p11 }
  0xaa   : > { %2656 = shalt.err (!%p2653_p3)
}
  0xab   : > { %s2657_s19 = scalar_lea.vmem %s3097_s29, 2048  ;;  %s2791_s23 = smov [#allocation9]  }
  0xac   : > { %p2658_p12 = scmp.ne.s32.totalorder %s3097_s29, %s2657_s19  ;;  %s2662_s0 = sshll.u32 %s2791_s23, 4  ;;  %s2663_s0 = int_to_ptr.vmem [resolvable:$false] %s2662_s0 }
  0xad   : > { %s2664_s9 = scalar_lea.vmem %s2663_s0, 4096  ;;  %p2665_p10 = scmp.lt.s32.totalorder %s3097_s29, %s2663_s0 }
  0xae   : > { %p2660_p5 = pnand %p2658_p12, %p3780_p7  ;;  %p2666_p8 = scmp.lt.s32.totalorder %s2664_s9, %s2657_s19 }
  0xb0   : > { %p2661_p6 = pneg %p2660_p5  ;;  %p2667_p1 = por %p2666_p8, %p2665_p10 }
  0xb2   : > { %p2668_p4 = pnand %p2667_p1, %p2661_p6 }
  0xb4   : > { %2671 = shalt.err (!%p2668_p4)
}
  0xb5   : > { %2399 = dma.hbm_to_vmem [thread:$0]  (!%p3781_p13), %s3094_s2, 2048, %s3097_s29, %s2996_s27, %s2787_s11, %s2787_s11, %s2788_s24  }
  0xb6   : > { %p3782_p7 = scmp.ne.s32.totalorder %s3765_s25, 0 }
  0xb7   : > { %s3127_s4 = sand.u32 (!%p3782_p7), 1, %s2756_s12   ;;  %p3783_p11 = scmp.ne.s32.totalorder (!%p3782_p7), %s3760_s22, 0 }
  0xb8   : > { %336 = sbr.rel (%p3782_p7) target bundleno = 789 (0x315), region = 44  ;;  %s1938_s7 = sshll.u32 (!%p3782_p7), %s3127_s4, 7 }
  0xb9   : > { %s339_s16 = scalar_lea.sflag (!%p3782_p7), [#allocation5], %s3127_s4  ;;  %s3131_s30 = scalar_lea.vmem (!%p3782_p7), [#allocation4], %s1938_s7 }
  0xbf   : > { %2735 = dma.done.wait (%p3783_p11), %s339_s16, 2048  }
  0xc0   : > { %2737 = vsyncadd (%p3783_p11), %s339_s16, 4294965248  ;;  %s347_s20 = sand.u32 1, %s2889_s18   ;;  %s3138_s27 = scalar_lea.vmem [#allocation7], %s1938_s7 }
  0xc1   : > { %s348_s25 = scalar_lea.sflag [#allocation8], %s347_s20 }
  0xc2   : > { %2739 = dma.done.wait (%p3783_p11), %s348_s25, 4096  }
  0xc3   : > { %2741 = vsyncadd (%p3783_p11), %s348_s25, 4294963200  ;;  %s3144_s11 = scalar_lea.vmem [#allocation9], %s1938_s7  ;;  %p3784_p13 = scmp.eq.s32.totalorder %s2889_s18, 0 }
  0xc5   : > { %2743 = dma.done.wait (%p3784_p13), [#allocation11], 3072   ;;  %p3785_p9 = pmov %p3784_p13 }
  0xc6   : > { %v2792_v0 = vmov 0   ;;  %v2484_v1 = vld [vmem:[#allocation10 + $0x4] ss:$8 sps:$4 sm:$0xff]   ;;  %v2486_v2 = vld [vmem:[#allocation10] ss:$8 sps:$4 sm:$0xff]   ;;  %s412_s24 = sld [smem:[#allocation3]] }
  0xc7   : > { %2745 = vsyncadd (%p3785_p9), [#allocation11], 4294964224  ;;  %926 = vmatprep.mubr.bf16.mxu0 %v2792_v0  ;;  %1046 = vmatprep.mubr.bf16.mxu1 %v2792_v0  ;;  %v2487_v3 = vld [vmem:[#allocation10 + $0x14] ss:$8 sps:$4 sm:$0xff]   ;;  %s1944_s22 = sld [smem:[#allocation3 + $0x1]]  ;;  %s1945_s2 = sld [smem:[#allocation3 + $0x2]] }
  0xc8   : > { %894 = vmatprep.subr.bf16.mxu0 %v2484_v1  ;;  %2351 = vmatprep.subr.bf16.mxu1 %v2484_v1  ;;  %v2489_v4 = vld [vmem:[#allocation10 + $0x10] ss:$8 sps:$4 sm:$0xff]   ;;  %v2490_v5 = vld [vmem:[#allocation10 + $0x24] ss:$8 sps:$4 sm:$0xff]   ;;  %v2492_v6 = vld [vmem:[#allocation10 + $0x20] ss:$8 sps:$4 sm:$0xff]  }
  0xc9   : > { %895 = vmatpush1.bf16.msra.mxu0 %v2486_v2  ;;  %2359 = vmatpush1.bf16.msra.mxu1 %v2486_v2  ;;  %v2493_v7 = vld [vmem:[#allocation10 + $0x34] ss:$8 sps:$4 sm:$0xff]   ;;  %v2495_v8 = vld [vmem:[#allocation10 + $0x30] ss:$8 sps:$4 sm:$0xff]   ;;  %v2043_v9 = vld [vmem:[%s3131_s30] sm:$0xff]   ;;  %s1943_s28 = sshll.u32 %s3127_s4, 8 }
  0xca   : > { %896 = vmatprep.subr.bf16.mxu0 %v2487_v3  ;;  %2352 = vmatprep.subr.bf16.mxu1 %v2487_v3  ;;  %v2044_v12 = vunpack.c.l.bf16 %v2043_v9  ;;  %v2045_v13 = vunpack.c.h.bf16 %v2043_v9  ;;  %v2107_v14 = vld [vmem:[%s3138_s27] sm:$0xff]   ;;  %v2234_v17 = vld [vmem:[%s3131_s30 + $0x8] sm:$0xff]   ;;  %v2235_v33 = vld [vmem:[%s3131_s30 + $0x10] sm:$0xff]   ;;  %s3572_s26 = scalar_lea.vmem [#allocation13], %s1943_s28  ;;  %s2041_s21 = sshll.u32 %s2764_s14, 6 }
  0xcb   : > { %v2171_v15 = vld [vmem:[%s3144_s11] sm:$0xff]   ;;  %v2108_v19 = vunpack.c.l.bf16 %v2107_v14  ;;  %v2109_v20 = vunpack.c.h.bf16 %v2107_v14  ;;  %v2249_v23 = vld [vmem:[%s3138_s27 + $0x8] sm:$0xff]   ;;  %v2048_v26 = vunpack.c.l.bf16 %v2234_v17  ;;  %v2049_v27 = vunpack.c.h.bf16 %v2234_v17  ;;  %v2499_v39 = vld [vmem:[#allocation10 + $0x54] ss:$8 sps:$4 sm:$0xff]   ;;  %s2005_s10 = sshll.u32 %s2768_s15, 7  ;;  %s1761_s15 = sshll.u32 %s3572_s26, 4  ;;  %s3667_s15 = int_to_ptr.vmem [resolvable:$true] %s1761_s15 }
  0xcc   : > { %v3153_v10 = vstv %s412_s24  ;;  %v2496_v18 = vld [vmem:[#allocation10 + $0x44] ss:$8 sps:$4 sm:$0xff]   ;;  %v2172_v21 = vunpack.c.l.bf16 %v2171_v15  ;;  %v2173_v22 = vunpack.c.h.bf16 %v2171_v15  ;;  %v2498_v34 = vld [vmem:[#allocation10 + $0x40] ss:$8 sps:$4 sm:$0xff]   ;;  %v2112_v37 = vunpack.c.l.bf16 %v2249_v23  ;;  %v2250_v48 = vld [vmem:[%s3138_s27 + $0x10] sm:$0xff]   ;;  %s1758_s8 = sadd.s32 %s2041_s21, %s2005_s10  ;;  %s3786_s19 = sld [smem:[#allocation22_spill]] }
  0xcd   : > { %897 = vmatpush1.bf16.msra.mxu0 %v2489_v4  ;;  %2360 = vmatpush1.bf16.msra.mxu1 %v2489_v4  ;;  %v3155_v11 = vstv %s1944_s22  ;;  %v3159_v16 = vstv %s1945_s2  ;;  %v478_v24 = vmul.f32 %v2044_v12, %v3153_v10  ;;  %v479_v25 = vmul.f32 %v2045_v13, %v3153_v10  ;;  %v2264_v28 = vld [vmem:[%s3144_s11 + $0x8] sm:$0xff]   ;;  %v2265_v49 = vld [vmem:[%s3144_s11 + $0x10] sm:$0xff]   ;;  %s2006_s14 = sshll.u32 %s1758_s8, 6  ;;  %s3787_s9 = sld [smem:[#allocation29_spill]] }
  0xce   : > { %898 = vmatprep.subr.bf16.mxu0 %v2490_v5  ;;  %2353 = vmatprep.subr.bf16.mxu1 %v2490_v5  ;;  %v576_v29 = vmul.f32 %v2108_v19, %v3155_v11  ;;  %v577_v30 = vmul.f32 %v2109_v20, %v3155_v11  ;;  %v706_v31 = vmul.f32 %v2172_v21, %v3159_v16  ;;  %v2113_v38 = vunpack.c.h.bf16 %v2249_v23  ;;  %v2236_v52 = vld [vmem:[%s3131_s30 + $0x18] sm:$0xff]   ;;  %v2502_v57 = vld [vmem:[#allocation10 + $0x64] ss:$8 sps:$4 sm:$0xff]   ;;  %v2504_v12 = vld [vmem:[#allocation10 + $0x60] ss:$8 sps:$4 sm:$0xff]   ;;  %s1745_s16 = scalar_lea.sflag [#allocation6], %s3127_s4 }
  0xcf   : > { %v707_v32 = vmul.f32 %v2173_v22, %v3159_v16  ;;  %v480_v35 = vmul.f32 %v2048_v26, %v3153_v10  ;;  %v481_v36 = vmul.f32 %v2049_v27, %v3153_v10  ;;  %v2176_v42 = vunpack.c.l.bf16 %v2264_v28  ;;  %v2501_v53 = vld [vmem:[#allocation10 + $0x50] ss:$8 sps:$4 sm:$0xff]   ;;  %v2237_v9 = vld [vmem:[%s3131_s30 + $0x20] sm:$0xff]   ;;  %s2793_s20 = smov [#allocation13]  }
  0xd0   : > { %v608_v40 = vadd.f32 %v576_v29, %v478_v24  ;;  %v609_v41 = vadd.f32 %v577_v30, %v479_v25  ;;  %v2177_v43 = vunpack.c.h.bf16 %v2264_v28  ;;  %v578_v44 = vmul.f32 %v2112_v37, %v3155_v11  ;;  %v2251_v62 = vld [vmem:[%s3138_s27 + $0x18] sm:$0xff]   ;;  %v2252_v26 = vld [vmem:[%s3138_s27 + $0x20] sm:$0xff]   ;;  %v2238_v37 = vld [vmem:[%s3131_s30 + $0x28] sm:$0xff]   ;;  %s2676_s25 = sshll.u32 %s2793_s20, 4  ;;  %s2677_s25 = int_to_ptr.vmem [resolvable:$false] %s2676_s25 }
  0xd1   : > { %899 = vmatpush1.bf16.msra.mxu0 %v2492_v6  ;;  %2361 = vmatpush1.bf16.msra.mxu1 %v2492_v6  ;;  %v579_v45 = vmul.f32 %v2113_v38, %v3155_v11  ;;  %v2052_v46 = vunpack.c.l.bf16 %v2235_v33  ;;  %v2053_v47 = vunpack.c.h.bf16 %v2235_v33  ;;  %v708_v50 = vmul.f32 %v2176_v42, %v3159_v16  ;;  %v2507_v27 = vld [vmem:[#allocation10 + $0x70] ss:$8 sps:$4 sm:$0xff]   ;;  %v2253_v42 = vld [vmem:[%s3138_s27 + $0x28] sm:$0xff]   ;;  %p2679_p5 = scmp.lt.s32.totalorder %s3667_s15, %s2677_s25 }
  0xd2   : > { %900 = vmatprep.subr.bf16.mxu0 %v2493_v7  ;;  %2354 = vmatprep.subr.bf16.mxu1 %v2493_v7  ;;  %v709_v51 = vmul.f32 %v2177_v43, %v3159_v16  ;;  %v610_v54 = vadd.f32 %v578_v44, %v480_v35  ;;  %v2116_v59 = vunpack.c.l.bf16 %v2250_v48  ;;  %v2117_v60 = vunpack.c.h.bf16 %v2250_v48  ;;  %p3788_p2 = scmp.ne.s32.totalorder %s3786_s19, 0 }
  0xd3   : > { %v611_v55 = vadd.f32 %v579_v45, %v481_v36  ;;  %v482_v56 = vmul.f32 %v2052_v46, %v3153_v10  ;;  %v483_v58 = vmul.f32 %v2053_v47, %v3153_v10  ;;  %v2180_v61 = vunpack.c.l.bf16 %v2265_v49  ;;  %v3216_v47 = vld [vmem:[#allocation12] sm:$0xff]   ;;  %s3665_s7 = scalar_lea.hbm %s3787_s9, %s2006_s14 }
  0xd4   : > { %v3183_v63 = vadd.f32 %v706_v31, %v608_v40  ;;  %v3185_v1 = vadd.f32 %v707_v32, %v609_v41  ;;  %v2181_v2 = vunpack.c.h.bf16 %v2265_v49  ;;  %v2056_v3 = vunpack.c.l.bf16 %v2236_v52  ;;  %v2267_v32 = vld [vmem:[%s3144_s11 + $0x20] sm:$0xff]  }
  0xd5   : > { %901 = vmatpush1.bf16.msra.mxu0 %v2495_v8  ;;  %2362 = vmatpush1.bf16.msra.mxu1 %v2495_v8  ;;  %v3187_v4 = vadd.f32 %v708_v50, %v610_v54  ;;  %v3189_v5 = vadd.f32 %v709_v51, %v611_v55  ;;  %v580_v6 = vmul.f32 %v2116_v59, %v3155_v11  ;;  %v2266_v8 = vld [vmem:[%s3144_s11 + $0x18] sm:$0xff]   ;;  %v2057_v15 = vunpack.c.h.bf16 %v2236_v52  ;;  %v2268_v52 = vld [vmem:[%s3144_s11 + $0x28] sm:$0xff]  }
  0xd6   : > { %902 = vmatprep.subr.bf16.mxu0 %v2496_v18  ;;  %2355 = vmatprep.subr.bf16.mxu1 %v2496_v18  ;;  %v581_v7 = vmul.f32 %v2117_v60, %v3155_v11  ;;  %v710_v13 = vmul.f32 %v2180_v61, %v3159_v16  ;;  %v711_v14 = vmul.f32 %v2181_v2, %v3159_v16  ;;  %v2120_v17 = vunpack.c.l.bf16 %v2251_v62  ;;  %v2505_v18 = vld [vmem:[#allocation10 + $0x74] ss:$8 sps:$4 sm:$0xff]  }
  0xd7   : > { %v612_v19 = vadd.f32 %v580_v6, %v482_v56  ;;  %v484_v21 = vmul.f32 %v2056_v3, %v3153_v10  ;;  %v2121_v22 = vunpack.c.h.bf16 %v2251_v62  ;;  %v2184_v24 = vunpack.c.l.bf16 %v2266_v8  ;;  %v2254_v3 = vld [vmem:[%s3138_s27 + $0x30] sm:$0xff]  }
  0xd8   : > { %v613_v20 = vadd.f32 %v581_v7, %v483_v58  ;;  %v582_v23 = vmul.f32 %v2120_v17, %v3155_v11  ;;  %v2060_v25 = vunpack.c.l.bf16 %v2237_v9  ;;  %v770_v28 = vpack.c.bf16 %v3185_v1, %v3183_v63  ;;  %v2269_v17 = vld [vmem:[%s3144_s11 + $0x30] sm:$0xff]  }
  0xd9   : > { %903 = vmatpush1.bf16.msra.mxu0 %v2498_v34  ;;  %2363 = vmatpush1.bf16.msra.mxu1 %v2498_v34  ;;  %v771_v29 = vpack.c.bf16 %v3189_v5, %v3187_v4  ;;  %v2185_v30 = vunpack.c.h.bf16 %v2266_v8  ;;  %v2061_v31 = vunpack.c.h.bf16 %v2237_v9  ;;  %v3205_v33 = vadd.f32 %v710_v13, %v612_v19 }
  0xda   : > { %904 = vmatprep.subr.bf16.mxu0 %v2499_v39  ;;  %2356 = vmatprep.subr.bf16.mxu1 %v2499_v39  ;;  %v3207_v34 = vadd.f32 %v711_v14, %v613_v20  ;;  %v485_v35 = vmul.f32 %v2057_v15, %v3153_v10  ;;  %v583_v36 = vmul.f32 %v2121_v22, %v3155_v11  ;;  %v2124_v41 = vunpack.c.l.bf16 %v2252_v26 }
  0xdb   : > { %v614_v38 = vadd.f32 %v582_v23, %v484_v21  ;;  %v712_v39 = vmul.f32 %v2184_v24, %v3159_v16  ;;  %v486_v40 = vmul.f32 %v2060_v25, %v3153_v10  ;;  %v487_v43 = vmul.f32 %v2061_v31, %v3153_v10  ;;  %v2255_v23 = vld [vmem:[%s3138_s27 + $0x38] sm:$0xff]  }
  0xdc   : > { %v2125_v44 = vunpack.c.h.bf16 %v2252_v26  ;;  %v2188_v45 = vunpack.c.l.bf16 %v2267_v32  ;;  %v2189_v46 = vunpack.c.h.bf16 %v2267_v32  ;;  %v713_v48 = vmul.f32 %v2185_v30, %v3159_v16 }
  0xdd   : > { %905 = vmatpush1.bf16.msra.mxu0 %v2501_v53  ;;  %2364 = vmatpush1.bf16.msra.mxu1 %v2501_v53  ;;  %v584_v49 = vmul.f32 %v2124_v41, %v3155_v11  ;;  %v2064_v50 = vunpack.c.l.bf16 %v2238_v37  ;;  %v2065_v51 = vunpack.c.h.bf16 %v2238_v37  ;;  %v2239_v53 = vld [vmem:[%s3131_s30 + $0x30] sm:$0xff]   ;;  %v615_v54 = vadd.f32 %v583_v36, %v485_v35 }
  0xde   : > { %906 = vmatprep.subr.bf16.mxu0 %v2502_v57  ;;  %2357 = vmatprep.subr.bf16.mxu1 %v2502_v57  ;;  %v585_v55 = vmul.f32 %v2125_v44, %v3155_v11  ;;  %v714_v56 = vmul.f32 %v2188_v45, %v3159_v16  ;;  %v2128_v57 = vunpack.c.l.bf16 %v2253_v42  ;;  %v715_v59 = vmul.f32 %v2189_v46, %v3159_v16  ;;  %v3257_v46 = vld [vmem:[%s3144_s11 + $0x38] sm:$0xff]  }
  0xdf   : > { %v616_v58 = vadd.f32 %v584_v49, %v486_v40  ;;  %v488_v60 = vmul.f32 %v2064_v50, %v3153_v10  ;;  %v489_v61 = vmul.f32 %v2065_v51, %v3153_v10  ;;  %v2129_v63 = vunpack.c.h.bf16 %v2253_v42  ;;  %v2241_v42 = vld [vmem:[%s3131_s30 + $0x40] sm:$0xff]  }
  0xe0   : > { %v617_v62 = vadd.f32 %v585_v55, %v487_v43  ;;  %v586_v1 = vmul.f32 %v2128_v57, %v3155_v11  ;;  %v2192_v2 = vunpack.c.l.bf16 %v2268_v52  ;;  %v3230_v6 = vadd.f32 %v712_v39, %v614_v38  ;;  %v2242_v57 = vld [vmem:[%s3131_s30 + $0x48] sm:$0xff]  }
  0xe1   : > { %907 = vmatpush1.bf16.msra.mxu0 %v2504_v12  ;;  %2365 = vmatpush1.bf16.msra.mxu1 %v2504_v12  ;;  %v2193_v7 = vunpack.c.h.bf16 %v2268_v52  ;;  %v2068_v8 = vunpack.c.l.bf16 %v2239_v53  ;;  %v2069_v9 = vunpack.c.h.bf16 %v2239_v53  ;;  %v3233_v12 = vadd.f32 %v713_v48, %v615_v54  ;;  %v2256_v48 = vld [vmem:[%s3138_s27 + $0x40] sm:$0xff]  }
  0xe2   : > { %908 = vmatprep.subr.bf16.mxu0 %v2505_v18  ;;  %2358 = vmatprep.subr.bf16.mxu1 %v2505_v18  ;;  %v587_v13 = vmul.f32 %v2129_v63, %v3155_v11  ;;  %v618_v14 = vadd.f32 %v586_v1, %v488_v60  ;;  %v716_v15 = vmul.f32 %v2192_v2, %v3159_v16  ;;  %v2240_v18 = vld [vmem:[%s3131_s30 + $0x38] sm:$0xff]   ;;  %v2132_v22 = vunpack.c.l.bf16 %v2254_v3  ;;  %v2271_v54 = vld [vmem:[%s3144_s11 + $0x40] sm:$0xff]  }
  0xe3   : > { %v3239_v19 = vadd.f32 %v714_v56, %v616_v58  ;;  %v717_v20 = vmul.f32 %v2193_v7, %v3159_v16  ;;  %v490_v21 = vmul.f32 %v2068_v8, %v3153_v10  ;;  %v3244_v24 = vadd.f32 %v715_v59, %v617_v62  ;;  %v2257_v62 = vld [vmem:[%s3138_s27 + $0x48] sm:$0xff]  }
  0xe4   : > { %v619_v25 = vadd.f32 %v587_v13, %v489_v61  ;;  %v491_v26 = vmul.f32 %v2069_v9, %v3153_v10  ;;  %v2196_v30 = vunpack.c.l.bf16 %v2269_v17  ;;  %v2197_v31 = vunpack.c.h.bf16 %v2269_v17 }
  0xe5   : > { %909 = vmatpush1.bf16.msra.mxu0 %v2507_v27  ;;  %2366 = vmatpush1.bf16.msra.mxu1 %v2507_v27  ;;  %v2133_v27 = vunpack.c.h.bf16 %v2254_v3  ;;  %v2072_v32 = vunpack.c.l.bf16 %v2240_v18  ;;  %v3248_v35 = vadd.f32 %v716_v15, %v618_v14  ;;  %v2136_v38 = vunpack.c.l.bf16 %v2255_v23 }
  0xe6   : > { %2303 = vmatprep.subr.bf16.mxu1 %v3216_v47  ;;  %v3250_v36 = vadd.f32 %v717_v20, %v619_v25  ;;  %v718_v40 = vmul.f32 %v2196_v30, %v3159_v16  ;;  %v2073_v41 = vunpack.c.h.bf16 %v2240_v18  ;;  %v719_v44 = vmul.f32 %v2197_v31, %v3159_v16  ;;  %v2272_v20 = vld [vmem:[%s3144_s11 + $0x48] sm:$0xff]  }
  0xe7   : > { %v589_v37 = vmul.f32 %v2133_v27, %v3155_v11  ;;  %v2137_v45 = vunpack.c.h.bf16 %v2255_v23  ;;  %v772_v49 = vpack.c.bf16 %v3207_v34, %v3205_v33  ;;  %v773_v50 = vpack.c.bf16 %v3233_v12, %v3230_v6  ;;  %v2260_v27 = vld [vmem:[%s3138_s27 + $0x60] sm:$0xff]  }
  0xe8   : > { %927 = vmatmul.mubr.bf16.vlgmr.msra.gmra.mrb[0].mxu0 %v770_v28  ;;  %v588_v28 = vmul.f32 %v2132_v22, %v3155_v11  ;;  %v774_v51 = vpack.c.bf16 %v3244_v24, %v3239_v19  ;;  %v492_v52 = vmul.f32 %v2072_v32, %v3153_v10  ;;  %v775_v53 = vpack.c.bf16 %v3250_v36, %v3248_v35 }
  0xe9   : > { %936 = vmatprep.mubr.bf16.mxu0 %v2792_v0  ;;  %v621_v43 = vadd.f32 %v589_v37, %v491_v26  ;;  %v590_v4 = vmul.f32 %v2136_v38, %v3155_v11  ;;  %v2076_v5 = vunpack.c.l.bf16 %v2241_v42  ;;  %v3278_v34 = vmul.f32 %v2073_v41, %v3153_v10 }
  0xea   : > { %v620_v39 = vadd.f32 %v588_v28, %v490_v21  ;;  %v2200_v55 = vunpack.c.l.bf16 %v3257_v46  ;;  %v2140_v56 = vunpack.c.l.bf16 %v2256_v48  ;;  %v3285_v59 = vmul.f32 %v2137_v45, %v3155_v11  ;;  %v2245_v21 = vld [vmem:[%s3131_s30 + $0x60] sm:$0xff]  }
  0xeb   : > { %v3282_v58 = vadd.f32 %v719_v44, %v621_v43  ;;  %v2201_v60 = vunpack.c.h.bf16 %v3257_v46  ;;  %v494_v61 = vmul.f32 %v2076_v5, %v3153_v10  ;;  %v2141_v1 = vunpack.c.h.bf16 %v2256_v48  ;;  %v2275_v45 = vld [vmem:[%s3144_s11 + $0x60] sm:$0xff]   ;;  %v2243_v48 = vld [vmem:[%s3131_s30 + $0x50] sm:$0xff]  }
  0xec   : > { %v3275_v33 = vadd.f32 %v718_v40, %v620_v39  ;;  %v592_v2 = vmul.f32 %v2140_v56, %v3155_v11  ;;  %v2204_v3 = vunpack.c.l.bf16 %v2271_v54  ;;  %v3292_v7 = vadd.f32 %v590_v4, %v492_v52 }
  0xed   : > { %v2205_v8 = vunpack.c.h.bf16 %v2271_v54  ;;  %v2080_v9 = vunpack.c.l.bf16 %v2242_v57  ;;  %v2081_v13 = vunpack.c.h.bf16 %v2242_v57  ;;  %v593_v14 = vmul.f32 %v2141_v1, %v3155_v11  ;;  %v2258_v57 = vld [vmem:[%s3138_s27 + $0x50] sm:$0xff]  }
  0xee   : > { %v624_v15 = vadd.f32 %v592_v2, %v494_v61  ;;  %v722_v17 = vmul.f32 %v2204_v3, %v3159_v16  ;;  %v2144_v18 = vunpack.c.l.bf16 %v2257_v62  ;;  %v3299_v22 = vmul.f32 %v2200_v55, %v3159_v16 }
  0xef   : > { %v723_v23 = vmul.f32 %v2205_v8, %v3159_v16  ;;  %v496_v25 = vmul.f32 %v2080_v9, %v3153_v10  ;;  %v497_v26 = vmul.f32 %v2081_v13, %v3153_v10  ;;  %v2145_v31 = vunpack.c.h.bf16 %v2257_v62  ;;  %v2273_v13 = vld [vmem:[%s3144_s11 + $0x50] sm:$0xff]  }
  0xf0   : > { %937 = vmatmul.mubr.bf16.gmra.mrb[4].mxu0 %v771_v29  ;;  %v2077_v29 = vunpack.c.h.bf16 %v2241_v42  ;;  %v3305_v30 = vadd.f32 %v722_v17, %v624_v15  ;;  %v594_v32 = vmul.f32 %v2144_v18, %v3155_v11  ;;  %v2208_v37 = vunpack.c.l.bf16 %v2272_v20 }
  0xf1   : > { %946 = vmatprep.mubr.bf16.mxu0 %v2792_v0  ;;  %v2209_v38 = vunpack.c.h.bf16 %v2272_v20  ;;  %v2092_v39 = vunpack.c.l.bf16 %v2245_v21  ;;  %v2093_v40 = vunpack.c.h.bf16 %v2245_v21  ;;  %v595_v42 = vmul.f32 %v2145_v31, %v3155_v11  ;;  %v2246_v20 = vld [vmem:[%s3131_s30 + $0x68] sm:$0xff]  }
  0xf2   : > { %v495_v63 = vmul.f32 %v2077_v29, %v3153_v10  ;;  %v626_v43 = vadd.f32 %v594_v32, %v496_v25  ;;  %v2156_v44 = vunpack.c.l.bf16 %v2260_v27  ;;  %v2157_v55 = vunpack.c.h.bf16 %v2260_v27  ;;  %v2261_v27 = vld [vmem:[%s3138_s27 + $0x68] sm:$0xff]  }
  0xf3   : > { %v725_v52 = vmul.f32 %v2209_v38, %v3159_v16  ;;  %v502_v4 = vmul.f32 %v2092_v39, %v3153_v10  ;;  %v503_v5 = vmul.f32 %v2093_v40, %v3153_v10  ;;  %v627_v54 = vadd.f32 %v595_v42, %v497_v26  ;;  %v2276_v39 = vld [vmem:[%s3144_s11 + $0x68] sm:$0xff]  }
  0xf4   : > { %v625_v28 = vadd.f32 %v593_v14, %v495_v63  ;;  %v600_v56 = vmul.f32 %v2156_v44, %v3155_v11  ;;  %v2220_v62 = vunpack.c.l.bf16 %v2275_v45  ;;  %v2221_v63 = vunpack.c.h.bf16 %v2275_v45  ;;  %v2244_v45 = vld [vmem:[%s3131_s30 + $0x58] sm:$0xff]  }
  0xf5   : > { %v2084_v1 = vunpack.c.l.bf16 %v2243_v48  ;;  %v3324_v2 = vadd.f32 %v725_v52, %v627_v54  ;;  %v601_v3 = vmul.f32 %v2157_v55, %v3155_v11  ;;  %v2085_v9 = vunpack.c.h.bf16 %v2243_v48 }
  0xf6   : > { %v3309_v41 = vadd.f32 %v723_v23, %v625_v28  ;;  %v632_v8 = vadd.f32 %v600_v56, %v502_v4  ;;  %v730_v14 = vmul.f32 %v2220_v62, %v3159_v16  ;;  %v731_v15 = vmul.f32 %v2221_v63, %v3159_v16  ;;  %v2509_v62 = vld [vmem:[#allocation12 + $0x8] sm:$0xff]  }
  0xf7   : > { %v498_v17 = vmul.f32 %v2084_v1, %v3153_v10  ;;  %v2148_v18 = vunpack.c.l.bf16 %v2258_v57  ;;  %v633_v23 = vadd.f32 %v601_v3, %v503_v5  ;;  %v499_v25 = vmul.f32 %v2085_v9, %v3153_v10  ;;  %v2259_v5 = vld [vmem:[%s3138_s27 + $0x58] sm:$0xff]  }
  0xf8   : > { %947 = vmatmul.mubr.bf16.gmra.mrb[8].mxu0 %v772_v49  ;;  %v724_v49 = vmul.f32 %v2208_v37, %v3159_v16  ;;  %v778_v29 = vpack.c.bf16 %v3309_v41, %v3305_v30  ;;  %v2149_v26 = vunpack.c.h.bf16 %v2258_v57  ;;  %v762_v28 = vadd.f32 %v730_v14, %v632_v8 }
  0xf9   : > { %956 = vmatprep.mubr.bf16.mxu0 %v2792_v0  ;;  %v596_v31 = vmul.f32 %v2148_v18, %v3155_v11  ;;  %v2212_v32 = vunpack.c.l.bf16 %v2273_v13  ;;  %v2213_v37 = vunpack.c.h.bf16 %v2273_v13  ;;  %v763_v6 = vadd.f32 %v731_v15, %v633_v23  ;;  %v2247_v18 = vld [vmem:[%s3131_s30 + $0x70] sm:$0xff]  }
  0xfa   : > { %v3322_v61 = vadd.f32 %v724_v49, %v626_v43  ;;  %v597_v12 = vmul.f32 %v2149_v26, %v3155_v11  ;;  %v2097_v38 = vunpack.c.h.bf16 %v2246_v20  ;;  %v2160_v44 = vunpack.c.l.bf16 %v2261_v27 }
  0xfb   : > { %v628_v40 = vadd.f32 %v596_v31, %v498_v17  ;;  %v726_v42 = vmul.f32 %v2212_v32, %v3159_v16  ;;  %v727_v43 = vmul.f32 %v2213_v37, %v3159_v16  ;;  %v782_v48 = vpack.c.bf16 %v763_v6, %v762_v28  ;;  %v2274_v17 = vld [vmem:[%s3144_s11 + $0x58] sm:$0xff]   ;;  %v2510_v28 = vld [vmem:[#allocation12 + $0x10] sm:$0xff]  }
  0xfc   : > { %v779_v21 = vpack.c.bf16 %v3324_v2, %v3322_v61  ;;  %v629_v49 = vadd.f32 %v597_v12, %v499_v25  ;;  %v505_v4 = vmul.f32 %v2097_v38, %v3153_v10  ;;  %v2161_v55 = vunpack.c.h.bf16 %v2261_v27  ;;  %v2262_v27 = vld [vmem:[%s3138_s27 + $0x70] sm:$0xff]  }
  0xfd   : > { %v3349_v54 = vadd.f32 %v726_v42, %v628_v40  ;;  %v602_v56 = vmul.f32 %v2160_v44, %v3155_v11  ;;  %v2224_v57 = vunpack.c.l.bf16 %v2276_v39  ;;  %1047 = vmatmul.mubr.bf16.vlgmr.msra.gmra.mrb[0].mxu1 %v782_v48  ;;  %v2225_v1 = vunpack.c.h.bf16 %v2276_v39  ;;  %v2277_v40 = vld [vmem:[%s3144_s11 + $0x70] sm:$0xff]   ;;  %v2248_v42 = vld [vmem:[%s3131_s30 + $0x78] sm:$0xff]   ;;  %s2672_s30 = scalar_lea.vmem %s3667_s15, 4096 }
  0xfe   : > { %v3352_v63 = vadd.f32 %v727_v43, %v629_v49  ;;  %v2088_v3 = vunpack.c.l.bf16 %v2244_v45  ;;  %v2089_v8 = vunpack.c.h.bf16 %v2244_v45  ;;  %1056 = vmatprep.mubr.bf16.mxu1 %v2792_v0  ;;  %v603_v9 = vmul.f32 %v2161_v55, %v3155_v11  ;;  %2304 = vmatpush3.bf16.msra.mxu1 %v3216_v47  ;;  %v2263_v55 = vld [vmem:[%s3138_s27 + $0x78] sm:$0xff]   ;;  %p2673_p0 = scmp.ne.s32.totalorder %s3667_s15, %s2672_s30  ;;  %s2678_s27 = scalar_lea.vmem %s2677_s25, 8192 }
  0xff   : > { %v732_v14 = vmul.f32 %v2224_v57, %v3159_v16  ;;  %v2152_v15 = vunpack.c.l.bf16 %v2259_v5  ;;  %v733_v23 = vmul.f32 %v2225_v1, %v3159_v16  ;;  %v2153_v32 = vunpack.c.h.bf16 %v2259_v5  ;;  %2305 = vmatprep.subr.bf16.mxu1 %v2509_v62  ;;  %p2680_p6 = scmp.lt.s32.totalorder %s2678_s27, %s2672_s30 }
 0x100   : > { %957 = vmatmul.mubr.bf16.gmra.mrb[12].mxu0 %v773_v50  ;;  %v2096_v50 = vunpack.c.l.bf16 %v2246_v20  ;;  %v780_v20 = vpack.c.bf16 %v3352_v63, %v3349_v54  ;;  %v500_v25 = vmul.f32 %v2088_v3, %v3153_v10  ;;  %v501_v26 = vmul.f32 %v2089_v8, %v3153_v10  ;;  %v2511_v3 = vld [vmem:[#allocation12 + $0x18] sm:$0xff]   ;;  %p2674_p3 = pnand %p2673_p0, %p3788_p2 }
 0x101   : > { %966 = vmatprep.mubr.bf16.mxu0 %v2792_v0  ;;  %v635_v47 = vadd.f32 %v603_v9, %v505_v4  ;;  %v598_v19 = vmul.f32 %v2152_v15, %v3155_v11  ;;  %v2216_v24 = vunpack.c.l.bf16 %v2274_v17  ;;  %v2100_v37 = vunpack.c.l.bf16 %v2247_v18  ;;  %v2278_v15 = vld [vmem:[%s3144_s11 + $0x78] sm:$0xff]   ;;  %p2681_p10 = por %p2680_p6, %p2679_p5 }
 0x102   : > { %v504_v52 = vmul.f32 %v2096_v50, %v3153_v10  ;;  %v2101_v6 = vunpack.c.h.bf16 %v2247_v18  ;;  %v599_v50 = vmul.f32 %v2153_v32, %v3155_v11  ;;  %v2164_v39 = vunpack.c.l.bf16 %v2262_v27  ;;  %2306 = vmatpush3.bf16.msra.mxu1 %v2509_v62  ;;  %p2675_p12 = pneg %p2674_p3 }
 0x103   : > { %v765_v12 = vadd.f32 %v733_v23, %v635_v47  ;;  %v630_v38 = vadd.f32 %v598_v19, %v500_v25  ;;  %v728_v43 = vmul.f32 %v2216_v24, %v3159_v16  ;;  %v506_v45 = vmul.f32 %v2100_v37, %v3153_v10  ;;  %2307 = vmatprep.subr.bf16.mxu1 %v2510_v28 }
 0x104   : > { %v634_v13 = vadd.f32 %v602_v56, %v504_v52  ;;  %v507_v48 = vmul.f32 %v2101_v6, %v3153_v10  ;;  %v631_v52 = vadd.f32 %v599_v50, %v501_v26  ;;  %v2165_v4 = vunpack.c.h.bf16 %v2262_v27  ;;  %p2682_p8 = pnand %p2681_p10, %p2675_p12 }
 0x105   : > { %v604_v5 = vmul.f32 %v2164_v39, %v3155_v11  ;;  %v760_v56 = vadd.f32 %v728_v43, %v630_v38  ;;  %v2228_v57 = vunpack.c.l.bf16 %v2277_v40  ;;  %v2229_v1 = vunpack.c.h.bf16 %v2277_v40 }
 0x106   : > { %v764_v31 = vadd.f32 %v732_v14, %v634_v13  ;;  %v2104_v62 = vunpack.c.l.bf16 %v2248_v42  ;;  %v605_v9 = vmul.f32 %v2165_v4, %v3155_v11  ;;  %v2105_v14 = vunpack.c.h.bf16 %v2248_v42  ;;  %2308 = vmatpush3.bf16.msra.mxu1 %v2510_v28 }
 0x107   : > { %v636_v13 = vadd.f32 %v604_v5, %v506_v45  ;;  %v735_v18 = vmul.f32 %v2229_v1, %v3159_v16  ;;  %v2168_v25 = vunpack.c.l.bf16 %v2263_v55  ;;  %v2232_v36 = vunpack.c.l.bf16 %v2278_v15  ;;  %2309 = vmatprep.subr.bf16.mxu1 %v2511_v3 }
 0x108   : > { %967 = vmatmul.mubr.bf16.gmra.mrb[16].mxu0 %v774_v51  ;;  %v2217_v51 = vunpack.c.h.bf16 %v2274_v17  ;;  %v783_v49 = vpack.c.bf16 %v765_v12, %v764_v31  ;;  %v734_v17 = vmul.f32 %v2228_v57, %v3159_v16  ;;  %v508_v23 = vmul.f32 %v2104_v62, %v3153_v10 }
 0x109   : > { %976 = vmatprep.mubr.bf16.mxu0 %v2792_v0  ;;  %v637_v27 = vadd.f32 %v605_v9, %v507_v48  ;;  %v509_v47 = vmul.f32 %v2105_v14, %v3153_v10  ;;  %v2169_v31 = vunpack.c.h.bf16 %v2263_v55  ;;  %v606_v35 = vmul.f32 %v2168_v25, %v3155_v11 }
 0x10a   : > { %v729_v44 = vmul.f32 %v2217_v51, %v3159_v16  ;;  %1057 = vmatmul.mubr.bf16.gmra.mrb[4].mxu1 %v783_v49  ;;  %v766_v32 = vadd.f32 %v734_v17, %v636_v13  ;;  %v776_v19 = vpack.c.bf16 %v3282_v58, %v3275_v33  ;;  %v721_v24 = vmul.f32 %v2201_v60, %v3159_v16 }
 0x10b   : > { %1066 = vmatprep.mubr.bf16.mxu1 %v2792_v0  ;;  %v767_v51 = vadd.f32 %v735_v18, %v637_v27  ;;  %v607_v37 = vmul.f32 %v2169_v31, %v3155_v11  ;;  %v623_v10 = vadd.f32 %v3285_v59, %v3278_v34  ;;  %v638_v28 = vadd.f32 %v606_v35, %v508_v23  ;;  %v2513_v59 = vld [vmem:[#allocation12 + $0x28] sm:$0xff]  }
 0x10c   : > { %v761_v8 = vadd.f32 %v729_v44, %v631_v52  ;;  %v736_v6 = vmul.f32 %v2232_v36, %v3159_v16  ;;  %2310 = vmatpush3.bf16.msra.mxu1 %v2511_v3  ;;  %v752_v46 = vadd.f32 %v3299_v22, %v3292_v7  ;;  %v2514_v7 = vld [vmem:[#allocation12 + $0x30] sm:$0xff]   ;;  %v2515_v22 = vld [vmem:[#allocation12 + $0x38] sm:$0xff]   ;;  %v804_v30 = vlaneseq }
 0x10d   : > { %v784_v50 = vpack.c.bf16 %v767_v51, %v766_v32  ;;  %v639_v38 = vadd.f32 %v607_v37, %v509_v47  ;;  %v753_v60 = vadd.f32 %v721_v24, %v623_v10 }
 0x10e   : > { %v781_v26 = vpack.c.bf16 %v761_v8, %v760_v56  ;;  %v768_v33 = vadd.f32 %v736_v6, %v638_v28  ;;  %v3419_v41 = vshrl.u32 %v804_v30, 7 }
 0x10f   : > { %v777_v34 = vpack.c.bf16 %v753_v60, %v752_v46 }
 0x110   : > { %977 = vmatmul.mubr.bf16.gmra.mrb[20].mxu0 %v775_v53  ;;  %v2233_v53 = vunpack.c.h.bf16 %v2278_v15 }
 0x111   : > { %986 = vmatprep.mubr.bf16.mxu0 %v2792_v0 }
 0x112   : > { %v737_v12 = vmul.f32 %v2233_v53, %v3159_v16  ;;  %1067 = vmatmul.mubr.bf16.gmra.mrb[8].mxu1 %v784_v50  ;;  %v2512_v16 = vld [vmem:[#allocation12 + $0x20] sm:$0xff]  }
 0x113   : > { %1076 = vmatprep.mubr.bf16.mxu1 %v2792_v0  ;;  %2311 = vmatprep.subr.bf16.mxu1 %v2512_v16 }
 0x114   : > { %v769_v58 = vadd.f32 %v737_v12, %v639_v38  ;;  %2312 = vmatpush3.bf16.msra.mxu1 %v2512_v16 }
 0x115   : > { %2313 = vmatprep.subr.bf16.mxu1 %v2513_v59 }
 0x116   : > { %v785_v11 = vpack.c.bf16 %v769_v58, %v768_v33 }
 0x118   : > { %987 = vmatmul.mubr.bf16.gmra.mrb[24].mxu0 %v776_v19  ;;  %2314 = vmatpush3.bf16.msra.mxu1 %v2513_v59 }
 0x119   : > { %996 = vmatprep.mubr.bf16.mxu0 %v2792_v0  ;;  %2315 = vmatprep.subr.bf16.mxu1 %v2514_v7 }
 0x11a   : > { %1077 = vmatmul.mubr.bf16.gmra.mrb[12].mxu1 %v785_v11 }
 0x11c   : > { %2316 = vmatpush3.bf16.msra.mxu1 %v2514_v7 }
 0x11d   : > { %2317 = vmatprep.subr.bf16.mxu1 %v2515_v22 }
 0x120   : > { %997 = vmatmul.mubr.bf16.gmra.mrb[28].mxu0 %v777_v34  ;;  %2318 = vmatpush3.bf16.msra.mxu1 %v2515_v22 }
 0x121   : > { %1006 = vmatprep.mubr.bf16.mxu0 %v2792_v0 }
 0x128   : > { %1007 = vmatmul.mubr.bf16.gmra.mrb[32].mxu0 %v778_v29  ;;  %v806_v29 = vsub.s32 0, %v3419_v41 }
 0x129   : > { %1016 = vmatprep.mubr.bf16.mxu0 %v2792_v0 }
 0x130   : > { %1017 = vmatmul.mubr.bf16.gmra.mrb[36].mxu0 %v779_v21 }
 0x131   : > { %1026 = vmatprep.mubr.bf16.mxu0 %v2792_v0 }
 0x138   : > { %1027 = vmatmul.mubr.bf16.gmra.mrb[40].mxu0 %v780_v20 }
 0x139   : > { %1036 = vmatprep.mubr.bf16.mxu0 %v2792_v0  ;;  %v3425_v0 = vld [vmem:[%s3729_s5] sm:$0x3] }
 0x13a   : > { %v3428_v61 = vrot.slane %v3425_v0, %v806_v29 }
 0x140   : > { %1037 = vmatmul.mubr.bf16.gmra.mrb[44].mxu0 %v781_v26 }
 0x1bb   : > { %v928_v2 = vpop.f32.mrb[0].mxu0 }
 0x1bc   : > { %v929_v21 = vadd.f32 %v928_v2, %v3428_v61  ;;  %v3431_v54 = vpop.f32.mrb[1].mxu0 }
 0x1bd   : > { %v932_v63 = vpop.f32.mrb[2].mxu0 }
 0x1be   : > { %v1151_v20 = vmul.f32 0.01, %v929_v21  ;;  %v933_v39 = vadd.f32 %v932_v63, %v3428_v61  ;;  %v3434_v40 = vpop.f32.mrb[3].mxu0  ;;  %vm1087_vm0 = vcmp.gt.f32.partialorder %v929_v21, 0.0 }
 0x1c0   : > { %vm1089_vm1 = vcmp.gt.f32.partialorder %v933_v39, 0.0  ;;  %v1153_v42 = vmul.f32 0.01, %v933_v39  ;;  %v1215_v43 = vsel %vm1087_vm0, %v929_v21, %v1151_v20 }
 0x1c2   : > { %v1217_v44 = vsel %vm1089_vm1, %v933_v39, %v1153_v42 }
 0x1c3   : > { %v938_v45 = vpop.f32.mrb[4].mxu0  ;;  %v1279_v48 = vpack.c.bf16 %v1217_v44, %v1215_v43 }
 0x1c4   : > { %v939_v49 = vadd.f32 %v938_v45, %v3428_v61  ;;  %v3437_v52 = vpop.f32.mrb[5].mxu0 }
 0x1c5   : > { %v942_v4 = vpop.f32.mrb[6].mxu0  ;;  %2319 = vmatprep.mubr.bf16.mxu1 %v1279_v48 }
 0x1c6   : > { %v1155_v5 = vmul.f32 0.01, %v939_v49  ;;  %v943_v55 = vadd.f32 %v942_v4, %v3428_v61  ;;  %v3440_v56 = vpop.f32.mrb[7].mxu0  ;;  %vm1091_vm2 = vcmp.gt.f32.partialorder %v939_v49, 0.0 }
 0x1c8   : > { %vm1093_vm3 = vcmp.gt.f32.partialorder %v943_v55, 0.0  ;;  %v1157_v57 = vmul.f32 0.01, %v943_v55  ;;  %v1219_v1 = vsel %vm1091_vm2, %v939_v49, %v1155_v5 }
 0x1ca   : > { %v1221_v62 = vsel %vm1093_vm3, %v943_v55, %v1157_v57 }
 0x1cb   : > { %v1280_v3 = vpack.c.bf16 %v1221_v62, %v1219_v1  ;;  %v948_v8 = vpop.f32.mrb[8].mxu0 }
 0x1cc   : > { %v949_v9 = vadd.f32 %v948_v8, %v3428_v61  ;;  %v3443_v13 = vpop.f32.mrb[9].mxu0 }
 0x1cd   : > { %v952_v14 = vpop.f32.mrb[10].mxu0  ;;  %2320 = vmatmul.mubr.bf16.vlgmr.msra.gmra.mrb[16].mxu1 %v1280_v3 }
 0x1ce   : > { %v1159_v15 = vmul.f32 0.01, %v949_v9  ;;  %v953_v17 = vadd.f32 %v952_v14, %v3428_v61  ;;  %v3446_v18 = vpop.f32.mrb[11].mxu0  ;;  %vm1095_vm4 = vcmp.gt.f32.partialorder %v949_v9, 0.0 }
 0x1d0   : > { %vm1097_vm5 = vcmp.gt.f32.partialorder %v953_v17, 0.0  ;;  %v1161_v23 = vmul.f32 0.01, %v953_v17  ;;  %v1223_v25 = vsel %vm1095_vm4, %v949_v9, %v1159_v15  ;;  %v1048_v51 = vpop.f32.mrb[0].mxu1 }
 0x1d1   : > { %v1049_v28 = vadd.f32 %v1048_v51, %v3428_v61  ;;  %v3455_v6 = vpop.f32.mrb[1].mxu1 }
 0x1d2   : > { %v1225_v26 = vsel %vm1097_vm5, %v953_v17, %v1161_v23  ;;  %v1052_v38 = vpop.f32.mrb[2].mxu1 }
 0x1d3   : > { %v958_v27 = vpop.f32.mrb[12].mxu0  ;;  %v1281_v47 = vpack.c.bf16 %v1225_v26, %v1223_v25  ;;  %v1199_v46 = vmul.f32 0.01, %v1049_v28  ;;  %v1053_v60 = vadd.f32 %v1052_v38, %v3428_v61  ;;  %v3461_v11 = vpop.f32.mrb[3].mxu1  ;;  %vm1135_vm8 = vcmp.gt.f32.partialorder %v1049_v28, 0.0 }
 0x1d4   : > { %v959_v31 = vadd.f32 %v958_v27, %v3428_v61  ;;  %v3449_v32 = vpop.f32.mrb[13].mxu0 }
 0x1d5   : > { %v962_v35 = vpop.f32.mrb[14].mxu0  ;;  %2323 = vmatprep.mubr.bf16.mxu1 %v1281_v47  ;;  %vm1137_vm9 = vcmp.gt.f32.partialorder %v1053_v60, 0.0  ;;  %v1201_v22 = vmul.f32 0.01, %v1053_v60  ;;  %v3466_v29 = vsel %vm1135_vm8, %v1049_v28, %v1199_v46 }
 0x1d6   : > { %v1163_v36 = vmul.f32 0.01, %v959_v31  ;;  %v963_v53 = vadd.f32 %v962_v35, %v3428_v61  ;;  %v3452_v19 = vpop.f32.mrb[15].mxu0  ;;  %vm1099_vm6 = vcmp.gt.f32.partialorder %v959_v31, 0.0 }
 0x1d7   : > { %v3468_v2 = vsel %vm1137_vm9, %v1053_v60, %v1201_v22 }
 0x1d8   : > { %vm1101_vm7 = vcmp.gt.f32.partialorder %v963_v53, 0.0  ;;  %v1165_v24 = vmul.f32 0.01, %v963_v53  ;;  %v1227_v37 = vsel %vm1099_vm6, %v959_v31, %v1163_v36  ;;  %v1291_v39 = vpack.c.bf16 %v3468_v2, %v3466_v29 }
 0x1da   : > { %v1229_v10 = vsel %vm1101_vm7, %v963_v53, %v1165_v24 }
 0x1db   : > { %v968_v12 = vpop.f32.mrb[16].mxu0  ;;  %v1282_v50 = vpack.c.bf16 %v1229_v10, %v1227_v37 }
 0x1dc   : > { %v969_v33 = vadd.f32 %v968_v12, %v3428_v61  ;;  %v3458_v58 = vpop.f32.mrb[17].mxu0 }
 0x1dd   : > { %v972_v34 = vpop.f32.mrb[18].mxu0  ;;  %2324 = vmatmul.mubr.bf16.gmra.mrb[20].mxu1 %v1282_v50  ;;  %v1058_v20 = vpop.f32.mrb[4].mxu1 }
 0x1de   : > { %v1167_v16 = vmul.f32 0.01, %v969_v33  ;;  %v973_v59 = vadd.f32 %v972_v34, %v3428_v61  ;;  %v3464_v7 = vpop.f32.mrb[19].mxu0  ;;  %vm1103_vm10 = vcmp.gt.f32.partialorder %v969_v33, 0.0  ;;  %v1059_v44 = vadd.f32 %v1058_v20, %v3428_v61  ;;  %v3473_v45 = vpop.f32.mrb[5].mxu1 }
 0x1df   : > { %v1062_v4 = vpop.f32.mrb[6].mxu1 }
 0x1e0   : > { %vm1105_vm11 = vcmp.gt.f32.partialorder %v973_v59, 0.0  ;;  %v1169_v30 = vmul.f32 0.01, %v973_v59  ;;  %v1231_v21 = vsel %vm1103_vm10, %v969_v33, %v1167_v16  ;;  %v1203_v55 = vmul.f32 0.01, %v1059_v44  ;;  %v3479_v1 = vpop.f32.mrb[7].mxu1 }
 0x1e1   : > { %v1063_v57 = vadd.f32 %v1062_v4, %v3428_v61  ;;  %vm1139_vm12 = vcmp.gt.f32.partialorder %v1059_v44, 0.0 }
 0x1e2   : > { %v1233_v63 = vsel %vm1105_vm11, %v973_v59, %v1169_v30  ;;  %v3484_v15 = vsel %vm1139_vm12, %v1059_v44, %v1203_v55 }
 0x1e3   : > { %v978_v42 = vpop.f32.mrb[20].mxu0  ;;  %v1283_v43 = vpack.c.bf16 %v1233_v63, %v1231_v21  ;;  %vm1141_vm14 = vcmp.gt.f32.partialorder %v1063_v57, 0.0  ;;  %v1205_v9 = vmul.f32 0.01, %v1063_v57 }
 0x1e4   : > { %v979_v48 = vadd.f32 %v978_v42, %v3428_v61  ;;  %v3476_v49 = vpop.f32.mrb[21].mxu0 }
 0x1e5   : > { %v982_v5 = vpop.f32.mrb[22].mxu0  ;;  %2327 = vmatprep.mubr.bf16.mxu1 %v1283_v43  ;;  %v3486_v17 = vsel %vm1141_vm14, %v1063_v57, %v1205_v9  ;;  %v1068_v26 = vpop.f32.mrb[8].mxu1 }
 0x1e6   : > { %v1171_v62 = vmul.f32 0.01, %v979_v48  ;;  %v983_v3 = vadd.f32 %v982_v5, %v3428_v61  ;;  %v3482_v8 = vpop.f32.mrb[23].mxu0  ;;  %vm1107_vm13 = vcmp.gt.f32.partialorder %v979_v48, 0.0  ;;  %v1292_v27 = vpack.c.bf16 %v3486_v17, %v3484_v15  ;;  %v3491_v36 = vpop.f32.mrb[9].mxu1 }
 0x1e7   : > { %v1069_v35 = vadd.f32 %v1068_v26, %v3428_v61  ;;  %v1072_v51 = vpop.f32.mrb[10].mxu1 }
 0x1e8   : > { %vm1109_vm15 = vcmp.gt.f32.partialorder %v983_v3, 0.0  ;;  %v1173_v14 = vmul.f32 0.01, %v983_v3  ;;  %v1235_v23 = vsel %vm1107_vm13, %v979_v48, %v1171_v62  ;;  %v1073_v28 = vadd.f32 %v1072_v51, %v3428_v61  ;;  %v3497_v12 = vpop.f32.mrb[11].mxu1 }
 0x1e9   : > { %v1207_v10 = vmul.f32 0.01, %v1069_v35  ;;  %vm1143_vm0 = vcmp.gt.f32.partialorder %v1069_v35, 0.0 }
 0x1ea   : > { %v1237_v25 = vsel %vm1109_vm15, %v983_v3, %v1173_v14  ;;  %vm1145_vm2 = vcmp.gt.f32.partialorder %v1073_v28, 0.0  ;;  %v1209_v46 = vmul.f32 0.01, %v1073_v28 }
 0x1eb   : > { %v988_v47 = vpop.f32.mrb[24].mxu0  ;;  %v1284_v31 = vpack.c.bf16 %v1237_v25, %v1235_v23  ;;  %v3502_v34 = vsel %vm1143_vm0, %v1069_v35, %v1207_v10 }
 0x1ec   : > { %v989_v53 = vadd.f32 %v988_v47, %v3428_v61  ;;  %v3494_v24 = vpop.f32.mrb[25].mxu0  ;;  %v3504_v16 = vsel %vm1145_vm2, %v1073_v28, %v1209_v46 }
 0x1ed   : > { %v992_v37 = vpop.f32.mrb[26].mxu0  ;;  %2328 = vmatmul.mubr.bf16.gmra.mrb[24].mxu1 %v1284_v31  ;;  %v1078_v30 = vpop.f32.mrb[12].mxu1  ;;  %v1293_v21 = vpack.c.bf16 %v3504_v16, %v3502_v34 }
 0x1ee   : > { %v1175_v50 = vmul.f32 0.01, %v989_v53  ;;  %v993_v38 = vadd.f32 %v992_v37, %v3428_v61  ;;  %v3500_v33 = vpop.f32.mrb[27].mxu0  ;;  %vm1111_vm1 = vcmp.gt.f32.partialorder %v989_v53, 0.0  ;;  %v1079_v42 = vadd.f32 %v1078_v30, %v3428_v61  ;;  %v3509_v43 = vpop.f32.mrb[13].mxu1 }
 0x1ef   : > { %v1082_v4 = vpop.f32.mrb[14].mxu1 }
 0x1f0   : > { %vm1113_vm3 = vcmp.gt.f32.partialorder %v993_v38, 0.0  ;;  %v1177_v60 = vmul.f32 0.01, %v993_v38  ;;  %v1239_v59 = vsel %vm1111_vm1, %v989_v53, %v1175_v50  ;;  %v1211_v55 = vmul.f32 0.01, %v1079_v42  ;;  %v3515_v62 = vpop.f32.mrb[15].mxu1 }
 0x1f1   : > { %v1083_v57 = vadd.f32 %v1082_v4, %v3428_v61  ;;  %vm1147_vm4 = vcmp.gt.f32.partialorder %v1079_v42, 0.0 }
 0x1f2   : > { %v1241_v22 = vsel %vm1113_vm3, %v993_v38, %v1177_v60  ;;  %v3520_v26 = vsel %vm1147_vm4, %v1079_v42, %v1211_v55 }
 0x1f3   : > { %v998_v63 = vpop.f32.mrb[28].mxu0  ;;  %v1285_v20 = vpack.c.bf16 %v1241_v22, %v1239_v59  ;;  %vm1149_vm6 = vcmp.gt.f32.partialorder %v1083_v57, 0.0  ;;  %v1213_v23 = vmul.f32 0.01, %v1083_v57 }
 0x1f4   : > { %v999_v44 = vadd.f32 %v998_v63, %v3428_v61  ;;  %v3512_v48 = vpop.f32.mrb[29].mxu0 }
 0x1f5   : > { %v1002_v5 = vpop.f32.mrb[30].mxu0  ;;  %2331 = vmatprep.mubr.bf16.mxu1 %v1285_v20  ;;  %v3522_v47 = vsel %vm1149_vm6, %v1083_v57, %v1213_v23 }
 0x1f6   : > { %v1179_v3 = vmul.f32 0.01, %v999_v44  ;;  %v1003_v9 = vadd.f32 %v1002_v5, %v3428_v61  ;;  %v3518_v14 = vpop.f32.mrb[31].mxu0  ;;  %vm1115_vm5 = vcmp.gt.f32.partialorder %v999_v44, 0.0  ;;  %v1294_v53 = vpack.c.bf16 %v3522_v47, %v3520_v26 }
 0x1f8   : > { %vm1117_vm7 = vcmp.gt.f32.partialorder %v1003_v9, 0.0  ;;  %v1181_v25 = vmul.f32 0.01, %v1003_v9  ;;  %v1243_v31 = vsel %vm1115_vm5, %v999_v44, %v1179_v3 }
 0x1fa   : > { %v1245_v35 = vsel %vm1117_vm7, %v1003_v9, %v1181_v25 }
 0x1fb   : > { %v1008_v51 = vpop.f32.mrb[32].mxu0  ;;  %v1286_v37 = vpack.c.bf16 %v1245_v35, %v1243_v31 }
 0x1fc   : > { %v1009_v10 = vadd.f32 %v1008_v51, %v3428_v61  ;;  %v3527_v28 = vpop.f32.mrb[33].mxu0 }
 0x1fd   : > { %v1012_v50 = vpop.f32.mrb[34].mxu0  ;;  %2332 = vmatmul.mubr.bf16.gmra.mrb[28].mxu1 %v1286_v37 }
 0x1fe   : > { %v1183_v38 = vmul.f32 0.01, %v1009_v10  ;;  %v1013_v46 = vadd.f32 %v1012_v50, %v3428_v61  ;;  %v3530_v60 = vpop.f32.mrb[35].mxu0  ;;  %vm1119_vm8 = vcmp.gt.f32.partialorder %v1009_v10, 0.0 }
 0x200   : > { %vm1121_vm9 = vcmp.gt.f32.partialorder %v1013_v46, 0.0  ;;  %v1185_v59 = vmul.f32 0.01, %v1013_v46  ;;  %v1247_v22 = vsel %vm1119_vm8, %v1009_v10, %v1183_v38 }
 0x202   : > { %v1249_v30 = vsel %vm1121_vm9, %v1013_v46, %v1185_v59 }
 0x203   : > { %v1018_v63 = vpop.f32.mrb[36].mxu0  ;;  %v1287_v20 = vpack.c.bf16 %v1249_v30, %v1247_v22 }
 0x204   : > { %v1019_v42 = vadd.f32 %v1018_v63, %v3428_v61  ;;  %v3533_v44 = vpop.f32.mrb[37].mxu0 }
 0x205   : > { %v1022_v4 = vpop.f32.mrb[38].mxu0  ;;  %2335 = vmatprep.mubr.bf16.mxu1 %v1287_v20 }
 0x206   : > { %v1187_v5 = vmul.f32 0.01, %v1019_v42  ;;  %v1023_v55 = vadd.f32 %v1022_v4, %v3428_v61  ;;  %v3536_v57 = vpop.f32.mrb[39].mxu0  ;;  %vm1123_vm10 = vcmp.gt.f32.partialorder %v1019_v42, 0.0 }
 0x208   : > { %vm1125_vm11 = vcmp.gt.f32.partialorder %v1023_v55, 0.0  ;;  %v1189_v3 = vmul.f32 0.01, %v1023_v55  ;;  %v1251_v9 = vsel %vm1123_vm10, %v1019_v42, %v1187_v5 }
 0x20a   : > { %v1253_v23 = vsel %vm1125_vm11, %v1023_v55, %v1189_v3 }
 0x20b   : > { %v1028_v25 = vpop.f32.mrb[40].mxu0  ;;  %v1288_v26 = vpack.c.bf16 %v1253_v23, %v1251_v9 }
 0x20c   : > { %v1029_v47 = vadd.f32 %v1028_v25, %v3428_v61  ;;  %v3539_v31 = vpop.f32.mrb[41].mxu0 }
 0x20d   : > { %v1032_v35 = vpop.f32.mrb[42].mxu0  ;;  %2336 = vmatmul.mubr.bf16.gmra.mrb[32].mxu1 %v1288_v26 }
 0x20e   : > { %v1191_v51 = vmul.f32 0.01, %v1029_v47  ;;  %v1033_v37 = vadd.f32 %v1032_v35, %v3428_v61  ;;  %v3542_v10 = vpop.f32.mrb[43].mxu0  ;;  %vm1127_vm12 = vcmp.gt.f32.partialorder %v1029_v47, 0.0 }
 0x210   : > { %vm1129_vm13 = vcmp.gt.f32.partialorder %v1033_v37, 0.0  ;;  %v1193_v50 = vmul.f32 0.01, %v1033_v37  ;;  %v1255_v38 = vsel %vm1127_vm12, %v1029_v47, %v1191_v51 }
 0x212   : > { %v1257_v46 = vsel %vm1129_vm13, %v1033_v37, %v1193_v50 }
 0x213   : > { %v1038_v59 = vpop.f32.mrb[44].mxu0  ;;  %v1289_v22 = vpack.c.bf16 %v1257_v46, %v1255_v38 }
 0x214   : > { %v1039_v30 = vadd.f32 %v1038_v59, %v3428_v61  ;;  %v3545_v63 = vpop.f32.mrb[45].mxu0 }
 0x215   : > { %v1042_v20 = vpop.f32.mrb[46].mxu0  ;;  %2339 = vmatprep.mubr.bf16.mxu1 %v1289_v22 }
 0x216   : > { %v1195_v42 = vmul.f32 0.01, %v1039_v30  ;;  %v1043_v4 = vadd.f32 %v1042_v20, %v3428_v61  ;;  %v3548_v5 = vpop.f32.mrb[47].mxu0  ;;  %vm1131_vm14 = vcmp.gt.f32.partialorder %v1039_v30, 0.0  ;;  %v810_v61 = vsub.s32 1, %v3419_v41 }
 0x218   : > { %vm1133_vm15 = vcmp.gt.f32.partialorder %v1043_v4, 0.0  ;;  %v1197_v55 = vmul.f32 0.01, %v1043_v4  ;;  %v1259_v3 = vsel %vm1131_vm14, %v1039_v30, %v1195_v42  ;;  %v3561_v25 = vrot.slane %v3425_v0, %v810_v61 }
 0x21a   : > { %v1261_v9 = vsel %vm1133_vm15, %v1043_v4, %v1197_v55  ;;  %v941_v26 = vadd.f32 %v3437_v52, %v3561_v25  ;;  %v931_v29 = vadd.f32 %v3431_v54, %v3561_v25  ;;  %v945_v2 = vadd.f32 %v3440_v56, %v3561_v25 }
 0x21b   : > { %v1290_v23 = vpack.c.bf16 %v1261_v9, %v1259_v3  ;;  %v961_v37 = vadd.f32 %v3449_v32, %v3561_v25  ;;  %v951_v50 = vadd.f32 %v3443_v13, %v3561_v25  ;;  %v965_v38 = vadd.f32 %v3452_v19, %v3561_v25 }
 0x21c   : > { %v1156_v15 = vmul.f32 0.01, %v941_v26  ;;  %v1152_v17 = vmul.f32 0.01, %v931_v29  ;;  %vm1092_vm0 = vcmp.gt.f32.partialorder %v941_v26, 0.0  ;;  %vm1088_vm1 = vcmp.gt.f32.partialorder %v931_v29, 0.0 }
 0x21d   : > { %2340 = vmatmul.mubr.bf16.gmra.mrb[36].mxu1 %v1290_v23  ;;  %v1158_v41 = vmul.f32 0.01, %v945_v2  ;;  %vm1094_vm2 = vcmp.gt.f32.partialorder %v945_v2, 0.0  ;;  %v955_v46 = vadd.f32 %v3446_v18, %v3561_v25  ;;  %v1164_v59 = vmul.f32 0.01, %v961_v37 }
 0x21e   : > { %2343 = vmatprep.mubr.bf16.mxu1 %v1291_v39  ;;  %v935_v39 = vadd.f32 %v3434_v40, %v3561_v25  ;;  %v1216_v16 = vsel %vm1088_vm1, %v931_v29, %v1152_v17  ;;  %v1160_v22 = vmul.f32 0.01, %v951_v50  ;;  %vm1100_vm4 = vcmp.gt.f32.partialorder %v961_v37, 0.0 }
 0x21f   : > { %v1166_v30 = vmul.f32 0.01, %v965_v38  ;;  %vm1096_vm5 = vcmp.gt.f32.partialorder %v951_v50, 0.0  ;;  %v1162_v20 = vmul.f32 0.01, %v955_v46  ;;  %vm1102_vm6 = vcmp.gt.f32.partialorder %v965_v38, 0.0 }
 0x220   : > { %v1154_v0 = vmul.f32 0.01, %v935_v39  ;;  %vm1090_vm3 = vcmp.gt.f32.partialorder %v935_v39, 0.0  ;;  %v1228_v32 = vsel %vm1100_vm4, %v961_v37, %v1164_v59  ;;  %vm1098_vm7 = vcmp.gt.f32.partialorder %v955_v46, 0.0 }
 0x221   : > { %v1224_v4 = vsel %vm1096_vm5, %v951_v50, %v1160_v22  ;;  %v1230_v3 = vsel %vm1102_vm6, %v965_v38, %v1166_v30  ;;  %v1226_v23 = vsel %vm1098_vm7, %v955_v46, %v1162_v20  ;;  %v981_v29 = vadd.f32 %v3476_v49, %v3561_v25 }
 0x222   : > { %v1218_v47 = vsel %vm1090_vm3, %v935_v39, %v1154_v0  ;;  %v985_v39 = vadd.f32 %v3482_v8, %v3561_v25  ;;  %v995_v37 = vadd.f32 %v3500_v33, %v3561_v25 }
 0x223   : > { %v1172_v17 = vmul.f32 0.01, %v981_v29  ;;  %vm1108_vm8 = vcmp.gt.f32.partialorder %v981_v29, 0.0 }
 0x224   : > { %v1174_v0 = vmul.f32 0.01, %v985_v39  ;;  %vm1110_vm10 = vcmp.gt.f32.partialorder %v985_v39, 0.0  ;;  %v1178_v59 = vmul.f32 0.01, %v995_v37  ;;  %vm1114_vm15 = vcmp.gt.f32.partialorder %v995_v37, 0.0 }
 0x225   : > { %2344 = vmatmul.mubr.bf16.gmra.mrb[40].mxu1 %v1292_v27  ;;  %v1220_v27 = vsel %vm1092_vm0, %v941_v26, %v1156_v15  ;;  %v975_v15 = vadd.f32 %v3464_v7, %v3561_v25  ;;  %v1236_v49 = vsel %vm1108_vm8, %v981_v29, %v1172_v17 }
 0x226   : > { %2347 = vmatprep.mubr.bf16.mxu1 %v1293_v21 }
 0x227   : > { %vm1106_vm11 = vcmp.gt.f32.partialorder %v975_v15, 0.0 }
 0x22d   : > { %2348 = vmatmul.mubr.bf16.gmra.mrb[44].mxu1 %v1294_v53  ;;  %v1222_v53 = vsel %vm1094_vm2, %v945_v2, %v1158_v41  ;;  %v971_v2 = vadd.f32 %v3458_v58, %v3561_v25 }
 0x22f   : > { %v1168_v41 = vmul.f32 0.01, %v971_v2  ;;  %vm1104_vm9 = vcmp.gt.f32.partialorder %v971_v2, 0.0 }
 0x2a0   : > { %v2321_v34 = vpop.f32.mrb[16].mxu1 }
 0x2a1   : > { %v2011_v52 = vpack.c.bf16 %v1220_v27, %v2321_v34  ;;  %v1393_v54 = vpop.f32.mrb[17].mxu1  ;;  %v1170_v27 = vmul.f32 0.01, %v975_v15 }
 0x2a2   : > { %v2009_v21 = vpack.c.bf16 %v1216_v16, %v1393_v54  ;;  %v2322_v56 = vpop.f32.mrb[18].mxu1  ;;  %v1238_v54 = vsel %vm1110_vm10, %v985_v39, %v1174_v0 }
 0x2a3   : > { %1714 = vst [vmem:[%s3572_s26 + $0x10] sm:$0xff] %v2011_v52  ;;  %v2012_v40 = vpack.c.bf16 %v1222_v53, %v2322_v56  ;;  %v1396_v35 = vpop.f32.mrb[19].mxu1  ;;  %v1232_v52 = vsel %vm1104_vm9, %v971_v2, %v1168_v41  ;;  %v1234_v53 = vsel %vm1106_vm11, %v975_v15, %v1170_v27 }
 0x2a4   : > { %1712 = vst [vmem:[%s3572_s26] sm:$0xff] %v2009_v21  ;;  %v2010_v51 = vpack.c.bf16 %v1218_v47, %v1396_v35  ;;  %v1001_v47 = vadd.f32 %v3512_v48, %v3561_v25  ;;  %v991_v35 = vadd.f32 %v3494_v24, %v3561_v25 }
 0x2a5   : > { %1715 = vst [vmem:[%s3572_s26 + $0x18] sm:$0xff] %v2012_v40 }
 0x2a6   : > { %1713 = vst [vmem:[%s3572_s26 + $0x8] sm:$0xff] %v2010_v51  ;;  %v1005_v51 = vadd.f32 %v3518_v14, %v3561_v25  ;;  %v1180_v50 = vmul.f32 0.01, %v1001_v47  ;;  %v1176_v38 = vmul.f32 0.01, %v991_v35  ;;  %vm1116_vm12 = vcmp.gt.f32.partialorder %v1001_v47, 0.0 }
 0x2a7   : > { %vm1112_vm13 = vcmp.gt.f32.partialorder %v991_v35, 0.0 }
 0x2a8   : > { %v1182_v46 = vmul.f32 0.01, %v1005_v51  ;;  %vm1118_vm14 = vcmp.gt.f32.partialorder %v1005_v51, 0.0  ;;  %v1244_v48 = vsel %vm1116_vm12, %v1001_v47, %v1180_v50  ;;  %v1240_v30 = vsel %vm1112_vm13, %v991_v35, %v1176_v38 }
 0x2a9   : > { %v1065_v47 = vadd.f32 %v3479_v1, %v3561_v25 }
 0x2ab   : > { %vm1142_vm10 = vcmp.gt.f32.partialorder %v1065_v47, 0.0 }
 0x2b0   : > { %v2325_v42 = vpop.f32.mrb[20].mxu1 }
 0x2b1   : > { %v2015_v13 = vpack.c.bf16 %v1228_v32, %v2325_v42  ;;  %v1409_v19 = vpop.f32.mrb[21].mxu1  ;;  %v1246_v32 = vsel %vm1118_vm14, %v1005_v51, %v1182_v46 }
 0x2b2   : > { %v2013_v55 = vpack.c.bf16 %v1224_v4, %v1409_v19  ;;  %v2326_v18 = vpop.f32.mrb[22].mxu1 }
 0x2b3   : > { %1718 = vst [vmem:[%s3572_s26 + $0x30] sm:$0xff] %v2015_v13  ;;  %v2016_v9 = vpack.c.bf16 %v1230_v3, %v2326_v18  ;;  %v1412_v61 = vpop.f32.mrb[23].mxu1  ;;  %v1242_v13 = vsel %vm1114_vm15, %v995_v37, %v1178_v59  ;;  %v1011_v3 = vadd.f32 %v3527_v28, %v3561_v25  ;;  %v1025_v18 = vadd.f32 %v3536_v57, %v3561_v25 }
 0x2b4   : > { %1716 = vst [vmem:[%s3572_s26 + $0x20] sm:$0xff] %v2013_v55  ;;  %v2014_v26 = vpack.c.bf16 %v1226_v23, %v1412_v61  ;;  %v1021_v55 = vadd.f32 %v3533_v44, %v3561_v25 }
 0x2b5   : > { %1719 = vst [vmem:[%s3572_s26 + $0x38] sm:$0xff] %v2016_v9  ;;  %v1015_v9 = vadd.f32 %v3530_v60, %v3561_v25  ;;  %v1184_v61 = vmul.f32 0.01, %v1011_v3  ;;  %vm1120_vm1 = vcmp.gt.f32.partialorder %v1011_v3, 0.0  ;;  %vm1126_vm2 = vcmp.gt.f32.partialorder %v1025_v18, 0.0 }
 0x2b6   : > { %1717 = vst [vmem:[%s3572_s26 + $0x28] sm:$0xff] %v2014_v26  ;;  %v1188_v23 = vmul.f32 0.01, %v1021_v55  ;;  %vm1124_vm0 = vcmp.gt.f32.partialorder %v1021_v55, 0.0  ;;  %v1190_v26 = vmul.f32 0.01, %v1025_v18 }
 0x2b7   : > { %v1186_v29 = vmul.f32 0.01, %v1015_v9  ;;  %vm1122_vm3 = vcmp.gt.f32.partialorder %v1015_v9, 0.0  ;;  %v1248_v39 = vsel %vm1120_vm1, %v1011_v3, %v1184_v61 }
 0x2b8   : > { %v1252_v44 = vsel %vm1124_vm0, %v1021_v55, %v1188_v23  ;;  %v1254_v17 = vsel %vm1126_vm2, %v1025_v18, %v1190_v26 }
 0x2b9   : > { %v1250_v0 = vsel %vm1122_vm3, %v1015_v9, %v1186_v29 }
 0x2c0   : > { %v2329_v34 = vpop.f32.mrb[24].mxu1 }
 0x2c1   : > { %v2019_v58 = vpack.c.bf16 %v1236_v49, %v2329_v34  ;;  %v1425_v8 = vpop.f32.mrb[25].mxu1  ;;  %v1041_v34 = vadd.f32 %v3545_v63, %v3561_v25  ;;  %v1061_v63 = vadd.f32 %v3473_v45, %v3561_v25  ;;  %v1055_v45 = vadd.f32 %v3461_v11, %v3561_v25 }
 0x2c2   : > { %v2017_v16 = vpack.c.bf16 %v1232_v52, %v1425_v8  ;;  %v2330_v7 = vpop.f32.mrb[26].mxu1  ;;  %v1045_v52 = vadd.f32 %v3548_v5, %v3561_v25  ;;  %v1035_v8 = vadd.f32 %v3542_v10, %v3561_v25  ;;  %v1081_v11 = vadd.f32 %v3509_v43, %v3561_v25 }
 0x2c3   : > { %1722 = vst [vmem:[%s3572_s26 + $0x50] sm:$0xff] %v2019_v58  ;;  %v2020_v21 = vpack.c.bf16 %v1238_v54, %v2330_v7  ;;  %v1428_v56 = vpop.f32.mrb[27].mxu1  ;;  %v1031_v58 = vadd.f32 %v3539_v31, %v3561_v25  ;;  %vm1132_vm4 = vcmp.gt.f32.partialorder %v1041_v34, 0.0  ;;  %v1051_v31 = vadd.f32 %v3455_v6, %v3561_v25 }
 0x2c4   : > { %1720 = vst [vmem:[%s3572_s26 + $0x40] sm:$0xff] %v2017_v16  ;;  %v2018_v40 = vpack.c.bf16 %v1234_v53, %v1428_v56  ;;  %v1196_v16 = vmul.f32 0.01, %v1041_v34  ;;  %v1198_v7 = vmul.f32 0.01, %v1045_v52  ;;  %vm1134_vm6 = vcmp.gt.f32.partialorder %v1045_v52, 0.0 }
 0x2c5   : > { %1723 = vst [vmem:[%s3572_s26 + $0x58] sm:$0xff] %v2020_v21  ;;  %v1192_v54 = vmul.f32 0.01, %v1031_v58  ;;  %vm1128_vm5 = vcmp.gt.f32.partialorder %v1031_v58, 0.0  ;;  %v1194_v21 = vmul.f32 0.01, %v1035_v8  ;;  %v1075_v43 = vadd.f32 %v3497_v12, %v3561_v25 }
 0x2c6   : > { %1721 = vst [vmem:[%s3572_s26 + $0x48] sm:$0xff] %v2018_v40  ;;  %v1260_v53 = vsel %vm1132_vm4, %v1041_v34, %v1196_v16  ;;  %vm1130_vm7 = vcmp.gt.f32.partialorder %v1035_v8, 0.0  ;;  %v1262_v51 = vsel %vm1134_vm6, %v1045_v52, %v1198_v7  ;;  %v1204_v59 = vmul.f32 0.01, %v1061_v63 }
 0x2c7   : > { %v1256_v10 = vsel %vm1128_vm5, %v1031_v58, %v1192_v54  ;;  %v1258_v38 = vsel %vm1130_vm7, %v1035_v8, %v1194_v21  ;;  %vm1140_vm8 = vcmp.gt.f32.partialorder %v1061_v63, 0.0  ;;  %vm1136_vm9 = vcmp.gt.f32.partialorder %v1051_v31, 0.0 }
 0x2c8   : > { %v1202_v1 = vmul.f32 0.01, %v1055_v45  ;;  %vm1138_vm11 = vcmp.gt.f32.partialorder %v1055_v45, 0.0  ;;  %v1212_v18 = vmul.f32 0.01, %v1081_v11  ;;  %vm1148_vm12 = vcmp.gt.f32.partialorder %v1081_v11, 0.0 }
 0x2c9   : > { %v1210_v61 = vmul.f32 0.01, %v1075_v43  ;;  %vm1146_vm15 = vcmp.gt.f32.partialorder %v1075_v43, 0.0 }
 0x2ca   : > { %v1276_v26 = vsel %vm1148_vm12, %v1081_v11, %v1212_v18 }
 0x2d0   : > { %v2333_v22 = vpop.f32.mrb[28].mxu1 }
 0x2d1   : > { %v2023_v24 = vpack.c.bf16 %v1244_v48, %v2333_v22  ;;  %v1441_v14 = vpop.f32.mrb[29].mxu1  ;;  %v1200_v48 = vmul.f32 0.01, %v1051_v31  ;;  %v1206_v22 = vmul.f32 0.01, %v1065_v47 }
 0x2d2   : > { %v2021_v20 = vpack.c.bf16 %v1240_v30, %v1441_v14  ;;  %v2334_v33 = vpop.f32.mrb[30].mxu1  ;;  %v1071_v14 = vadd.f32 %v3491_v36, %v3561_v25  ;;  %v1266_v36 = vsel %vm1138_vm11, %v1055_v45, %v1202_v1 }
 0x2d3   : > { %1726 = vst [vmem:[%s3572_s26 + $0x70] sm:$0xff] %v2023_v24  ;;  %v2024_v42 = vpack.c.bf16 %v1246_v32, %v2334_v33  ;;  %v1444_v4 = vpop.f32.mrb[31].mxu1  ;;  %v1268_v24 = vsel %vm1140_vm8, %v1061_v63, %v1204_v59  ;;  %v1264_v32 = vsel %vm1136_vm9, %v1051_v31, %v1200_v48 }
 0x2d4   : > { %1724 = vst [vmem:[%s3572_s26 + $0x60] sm:$0xff] %v2021_v20  ;;  %v2022_v19 = vpack.c.bf16 %v1242_v13, %v1444_v4  ;;  %v1270_v4 = vsel %vm1142_vm10, %v1065_v47, %v1206_v22  ;;  %v1208_v23 = vmul.f32 0.01, %v1071_v14  ;;  %vm1144_vm13 = vcmp.gt.f32.partialorder %v1071_v14, 0.0 }
 0x2d5   : > { %1727 = vst [vmem:[%s3572_s26 + $0x78] sm:$0xff] %v2024_v42  ;;  %v1085_v42 = vadd.f32 %v3515_v62, %v3561_v25 }
 0x2d6   : > { %1725 = vst [vmem:[%s3572_s26 + $0x68] sm:$0xff] %v2022_v19  ;;  %v1272_v29 = vsel %vm1144_vm13, %v1071_v14, %v1208_v23 }
 0x2d7   : > { %v1214_v62 = vmul.f32 0.01, %v1085_v42  ;;  %vm1150_vm14 = vcmp.gt.f32.partialorder %v1085_v42, 0.0 }
 0x2e0   : > { %v2337_v2 = vpop.f32.mrb[32].mxu1 }
 0x2e1   : > { %v2027_v28 = vpack.c.bf16 %v1252_v44, %v2337_v2  ;;  %v1457_v57 = vpop.f32.mrb[33].mxu1 }
 0x2e2   : > { %v2025_v15 = vpack.c.bf16 %v1248_v39, %v1457_v57  ;;  %v2338_v60 = vpop.f32.mrb[34].mxu1 }
 0x2e3   : > { %1730 = vst [vmem:[%s3572_s26 + $0x90] sm:$0xff] %v2027_v28  ;;  %v2028_v41 = vpack.c.bf16 %v1254_v17, %v2338_v60  ;;  %v1460_v27 = vpop.f32.mrb[35].mxu1  ;;  %v1278_v28 = vsel %vm1150_vm14, %v1085_v42, %v1214_v62 }
 0x2e4   : > { %1728 = vst [vmem:[%s3572_s26 + $0x80] sm:$0xff] %v2025_v15  ;;  %v2026_v49 = vpack.c.bf16 %v1250_v0, %v1460_v27  ;;  %v1274_v15 = vsel %vm1146_vm15, %v1075_v43, %v1210_v61 }
 0x2e5   : > { %1731 = vst [vmem:[%s3572_s26 + $0x98] sm:$0xff] %v2028_v41 }
 0x2e6   : > { %1729 = vst [vmem:[%s3572_s26 + $0x88] sm:$0xff] %v2026_v49 }
 0x2f0   : > { %v2341_v56 = vpop.f32.mrb[36].mxu1 }
 0x2f1   : > { %v2031_v5 = vpack.c.bf16 %v1260_v53, %v2341_v56  ;;  %v1473_v40 = vpop.f32.mrb[37].mxu1 }
 0x2f2   : > { %v2029_v35 = vpack.c.bf16 %v1256_v10, %v1473_v40  ;;  %v2342_v37 = vpop.f32.mrb[38].mxu1 }
 0x2f3   : > { %1734 = vst [vmem:[%s3572_s26 + $0xb0] sm:$0xff] %v2031_v5  ;;  %v2032_v50 = vpack.c.bf16 %v1262_v51, %v2342_v37  ;;  %v1476_v46 = vpop.f32.mrb[39].mxu1 }
 0x2f4   : > { %1732 = vst [vmem:[%s3572_s26 + $0xa0] sm:$0xff] %v2029_v35  ;;  %v2030_v6 = vpack.c.bf16 %v1258_v38, %v1476_v46 }
 0x2f5   : > { %1735 = vst [vmem:[%s3572_s26 + $0xb8] sm:$0xff] %v2032_v50 }
 0x2f6   : > { %1733 = vst [vmem:[%s3572_s26 + $0xa8] sm:$0xff] %v2030_v6 }
 0x2f8   : > { %v2345_v30 = vpop.f32.mrb[40].mxu1 }
 0x2f9   : > { %v2035_v20 = vpack.c.bf16 %v1268_v24, %v2345_v30  ;;  %v1489_v33 = vpop.f32.mrb[41].mxu1 }
 0x2fa   : > { %v2033_v13 = vpack.c.bf16 %v1264_v32, %v1489_v33  ;;  %v2346_v19 = vpop.f32.mrb[42].mxu1 }
 0x2fb   : > { %1738 = vst [vmem:[%s3572_s26 + $0xd0] sm:$0xff] %v2035_v20  ;;  %v2036_v55 = vpack.c.bf16 %v1270_v4, %v2346_v19  ;;  %v1492_v3 = vpop.f32.mrb[43].mxu1 }
 0x2fc   : > { %1736 = vst [vmem:[%s3572_s26 + $0xc0] sm:$0xff] %v2033_v13  ;;  %v2034_v9 = vpack.c.bf16 %v1266_v36, %v1492_v3 }
 0x2fd   : > { %1739 = vst [vmem:[%s3572_s26 + $0xd8] sm:$0xff] %v2036_v55 }
 0x2fe   : > { %1737 = vst [vmem:[%s3572_s26 + $0xc8] sm:$0xff] %v2034_v9 }
 0x300   : > { %v2349_v12 = vpop.f32.mrb[44].mxu1 }
 0x301   : > { %v2039_v25 = vpack.c.bf16 %v1276_v26, %v2349_v12  ;;  %v1505_v44 = vpop.f32.mrb[45].mxu1 }
 0x302   : > { %v2037_v2 = vpack.c.bf16 %v1272_v29, %v1505_v44  ;;  %v2350_v39 = vpop.f32.mrb[46].mxu1 }
 0x303   : > { %1742 = vst [vmem:[%s3572_s26 + $0xf0] sm:$0xff] %v2039_v25  ;;  %v2040_v57 = vpack.c.bf16 %v1278_v28, %v2350_v39  ;;  %v1508_v17 = vpop.f32.mrb[47].mxu1 }
 0x304   : > { %1740 = vst [vmem:[%s3572_s26 + $0xe0] sm:$0xff] %v2037_v2  ;;  %v2038_v60 = vpack.c.bf16 %v1274_v15, %v1508_v17 }
 0x305   : > { %1743 = vst [vmem:[%s3572_s26 + $0xf8] sm:$0xff] %v2040_v57 }
 0x306   : > { %1741 = vst [vmem:[%s3572_s26 + $0xe8] sm:$0xff] %v2038_v60 }
 0x307   : > { %2685 = shalt.err (!%p2682_p8)
}
 0x308   : > { %s2686_s11 = scalar_lea.hbm %s3665_s7, 4096  ;;  %s2690_s2 = scalar_lea.hbm %s3787_s9, 16384 }
 0x309   : > { %p2687_p1 = scmp.ne.s32.totalorder %s3665_s7, %s2686_s11  ;;  %p2691_p11 = scmp.lt.u32.totalorder %s3665_s7, %s3787_s9 }
 0x30a   : > { %p2692_p13 = scmp.lt.u32.totalorder %s2690_s2, %s2686_s11  ;;  %p2694_p0 = scmp.lt.u32.totalorder %s2686_s11, %s3665_s7 }
 0x30b   : > { %p2688_p4 = pnand %p2687_p1, %p3788_p2 }
 0x30c   : > { %p2693_p9 = por %p2692_p13, %p2691_p11 }
 0x30d   : > { %p2689_p7 = pneg %p2688_p4 }
 0x30e   : > { %p2695_p3 = por %p2694_p0, %p2693_p9 }
 0x310   : > { %p2696_p12 = pnand %p2695_p3, %p2689_p7 }
 0x312   : > { %2699 = shalt.err (!%p2696_p12)
}
 0x313   : > { %s2794_s28 = smov 128   ;;  %s2795_s26 = smov 8  }
 0x314   : > { %2381 = dma.vmem_to_hbm [thread:$0]  (%p3788_p2), %s3667_s15, 4096, %s3665_s7, %s1745_s16, %s2794_s28, %s2794_s28, %s2795_s26  }
 0x315 PF: > { %s3789_s21 = sld [smem:[#allocation19_spill]]  ;;  %s3790_s10 = sld [smem:[#allocation23_spill]] }
 0x316   : > { %p2409_p5 = scmp.ge.s32.totalorder %s2780_s17, 2 }
 0x31b   : > { %s1776_s8 = sand.u32 1, %s3789_s21   ;;  %p3791_p6 = scmp.ne.s32.totalorder %s3790_s10, 0 }
 0x31c   : > { %s1777_s14 = scalar_lea.sflag [#allocation6], %s1776_s8 }
 0x31d   : > { %p2401_p10 = pnand %p2409_p5, %p3791_p6 }
 0x31f   : > { %2747 = dma.done.wait (!%p2401_p10), %s1777_s14, 4096  }
 0x320   : > { %2749 = vsyncadd (!%p2401_p10), %s1777_s14, 4294963200  ;;  %s31_s17 = sadd.s32 1, %s2780_s17   ;;  %s3792_s23 = sld [smem:[#allocation26_spill]] }
 0x321   : > { %p28_p8 = scmp.ge.s32.totalorder %s31_s17, 6   ;;  %s3793_s14 = sld [smem:[#allocation20_spill]] }
 0x322   : > { %s3794_s15 = sld [smem:[#allocation21_spill]]  ;;  %s3795_s0 = sld [smem:[#allocation24_spill]] }
 0x323   : > { %s3796_s16 = sld [smem:[#allocation25_spill]]  ;;  %s3797_s11 = smov %s2756_s12 }
 0x324   : > { %s3798_s12 = smov %s2760_s13  ;;  %30 = sbr.rel (!%p28_p8) target bundleno = 23 (0x17), region = 121 }
 0x326   : > { %s3799_s13 = smov %s3792_s23 }
 0x32b   :  { %1782 = vsyncpa [#allocation5], 1 }
 0x32c   :  { %1784 = vsyncpa [#allocation5 + $0x1], 1 }
 0x32d   :  { %1785 = vsyncpa [#allocation8], 1 }
 0x32e   :  { %1787 = vsyncpa [#allocation8 + $0x1], 1 }
 0x32f   :  { %1788 = vsyncpa [#allocation11], 1 }
 0x330   :  { %1789 = vsyncpa [#allocation6], 1 }
 0x331   :  { %1791 = vsyncpa [#allocation6 + $0x1], 1 }

</bundles_post_ra>
